<compile_context>
chip_gen: v7x
topology: tpu7x:2x2x1
jax: 0.10.0
libtpu: 0.0.40
codegen_flags: <defaults>
</compile_context>

<pallas_src>
import functools

import jax
import jax.numpy as jnp
from jax.experimental import pallas as pl
from jax.experimental.pallas import tpu as pltpu


def _layernorm(h, gamma, beta, eps=1e-5):
    mu = jnp.mean(h, axis=-1, keepdims=True)
    var = jnp.mean((h - mu) ** 2, axis=-1, keepdims=True)
    return (h - mu) * jax.lax.rsqrt(var + eps) * gamma + beta


def block_kernel(x_ref,                              # (Bblk, T, C)
                 ln1_g_ref, ln1_b_ref,               # (1, C)
                 wqkv_ref,                           # (C, 3*H*D)  [q|k|v, head-major], scale folded into q cols
                 wproj_ref, bproj_ref,               # (H, D, C), (1, C)
                 ln2_g_ref, ln2_b_ref,               # (1, C)
                 w1_ref, b1_ref,                     # (C, 4C), (1, 4C)
                 w2_ref, b2_ref,                     # (4C, C), (1, C)
                 out_ref,                            # (Bblk, T, C)
                 *, n_heads, q_tile):
    f32 = jnp.float32
    x = x_ref[...]                                   # (Bb, T, C) f32
    Bb, T, C = x.shape
    H = n_heads
    D = wproj_ref.shape[1]
    HD = H * D
    M = Bb * T
    cdt = wqkv_ref.dtype                             # matmul-operand dtype (f32 or bf16)

    # ---- LayerNorm 1 (on flattened rows) ----
    xf = x.reshape(M, C)
    xn = _layernorm(xf, ln1_g_ref[...], ln1_b_ref[...])

    # ---- fused QKV projection: one wide MXU matmul over all Bblk*T rows ----
    qkv = jnp.dot(xn.astype(cdt), wqkv_ref[...], preferred_element_type=f32)  # (M, 3HD)
    qkv = qkv.reshape(Bb, T, 3 * HD)

    # ---- causal query tiling setup ----
    if q_tile is not None and T > q_tile and T % q_tile == 0:
        Tq = q_tile
    else:
        Tq = T
    nq = T // Tq

    # Per-tile additive causal bias (computed once, reused across heads).
    bias_tiles = []
    for qt in range(nq):
        kv_len = (qt + 1) * Tq
        row = jax.lax.broadcasted_iota(jnp.int32, (Tq, kv_len), 0) + qt * Tq
        col = jax.lax.broadcasted_iota(jnp.int32, (Tq, kv_len), 1)
        bias_tiles.append(jnp.where(col <= row, 0.0, -1e30).astype(f32))

    # ---- attention: per-head, batched over Bblk, query-tiled & causal ----
    sa = jnp.zeros((M, C), f32)
    for h in range(H):
        q_h = qkv[:, :, h * D:(h + 1) * D].astype(cdt)                  # (Bb, T, D), pre-scaled
        k_h = qkv[:, :, HD + h * D:HD + (h + 1) * D].astype(cdt)        # (Bb, T, D)
        v_h = qkv[:, :, 2 * HD + h * D:2 * HD + (h + 1) * D].astype(cdt)

        o_parts = []
        for qt in range(nq):
            r0 = qt * Tq
            kv_len = r0 + Tq                                             # causal upper bound
            qb = q_h[:, r0:r0 + Tq, :]                                   # (Bb, Tq, D)
            kb = k_h[:, :kv_len, :]                                      # (Bb, kv_len, D)
            vb = v_h[:, :kv_len, :]
            s = jnp.einsum('bqd,bkd->bqk', qb, kb,
                           preferred_element_type=f32)                   # (Bb, Tq, kv_len)
            s = s + bias_tiles[qt][None]
            m = jnp.max(s, axis=-1, keepdims=True)
            p = jnp.exp(s - m)
            l = jnp.sum(p, axis=-1, keepdims=True)
            o_u = jnp.einsum('bqk,bkd->bqd', p.astype(cdt), vb,
                             preferred_element_type=f32)                 # (Bb, Tq, D)
            o_parts.append(o_u / l)                                      # normalize after PV (exact)
        o_h = o_parts[0] if nq == 1 else jnp.concatenate(o_parts, axis=1)  # (Bb, T, D)

        # Output projection accumulated per head (no head concat / scratch).
        sa = sa + jnp.dot(o_h.reshape(M, D).astype(cdt), wproj_ref[h],
                          preferred_element_type=f32)

    x1 = xf + sa + bproj_ref[...]                                        # residual 1, (M, C)

    # ---- LayerNorm 2 + FeedForward + residual 2 ----
    xn2 = _layernorm(x1, ln2_g_ref[...], ln2_b_ref[...])
    hid = jnp.dot(xn2.astype(cdt), w1_ref[...], preferred_element_type=f32) + b1_ref[...]
    hid = jnp.maximum(hid, 0.0)                                          # ReLU
    ff = jnp.dot(hid.astype(cdt), w2_ref[...], preferred_element_type=f32) + b2_ref[...]

    out_ref[...] = (x1 + ff).reshape(Bb, T, C).astype(out_ref.dtype)


def prepare_block_params(params, *, compute_dtype=jnp.float32):
    """Hoisted weight fusion/casting: call once, reuse across forward calls."""
    H, C, D = params["wq"].shape
    HD = H * D
    scale = float(D) ** -0.5
    f32 = jnp.float32

    def heads_to_cols(w):                            # (H, C, D) -> (C, H*D)
        return jnp.transpose(w, (1, 0, 2)).reshape(C, HD)

    wqkv = jnp.concatenate([heads_to_cols(params["wq"]) * scale,   # fold 1/sqrt(D) into Wq
                            heads_to_cols(params["wk"]),
                            heads_to_cols(params["wv"])], axis=-1).astype(compute_dtype)
    return {
        "ln1_g": params["ln1_g"].astype(f32),
        "ln1_b": params["ln1_b"].astype(f32),
        "wqkv": wqkv,
        "wproj": params["wproj"].reshape(H, D, C).astype(compute_dtype),
        "bproj": params["bproj"].astype(f32),
        "ln2_g": params["ln2_g"].astype(f32),
        "ln2_b": params["ln2_b"].astype(f32),
        "w1": params["w1"].astype(compute_dtype),
        "b1": params["b1"].astype(f32),
        "w2": params["w2"].astype(compute_dtype),
        "b2": params["b2"].astype(f32),
    }


def transformer_block(x, fparams, *, q_tile=256):
    B, T, C = x.shape
    H, D, _ = fparams["wproj"].shape
    HD = H * D
    F4 = fparams["w1"].shape[1]

    bytes_of = lambda a: int(a.size) * jnp.dtype(a.dtype).itemsize
    weight_bytes = sum(bytes_of(fparams[k]) for k in fparams)

    # ---- VMEM budget per generation (never request the full capacity) ----
    try:
        vmem_cap = int(pltpu.get_tpu_info().vmem_capacity_bytes)
    except Exception:
        vmem_cap = 64 * 1024 * 1024                  # conservative (v7x per-TC)
    vmem_budget = int(vmem_cap * 0.8)

    tq = q_tile if (q_tile is not None and T > q_tile and T % q_tile == 0) else T

    def vmem_estimate(bblk):
        m = bblk * T
        act = 4 * (m * (3 * HD + 4 * C + F4) + 2 * bblk * tq * T)
        io = 2 * 2 * bblk * T * C * jnp.dtype(x.dtype).itemsize
        return 2 * weight_bytes + io + act           # conservative: weights double-buffered

    # ---- pick sequences-per-step: fill MXU M-dim, then shrink to fit VMEM ----
    divisors = [d for d in range(1, B + 1) if B % d == 0]
    desired = max(1, -(-256 // T))                   # ceil(256 / T) rows target
    bblk = max([d for d in divisors if d <= desired] or [1])
    while bblk > 1 and vmem_estimate(bblk) > vmem_budget:
        smaller = [d for d in divisors if d < bblk]
        bblk = max(smaller) if smaller else 1

    grid = (B // bblk,)
    seq_spec = pl.BlockSpec((bblk, T, C), lambda b: (b, 0, 0))

    flops = B * (2 * T * C * 3 * HD                  # fused QKV projection
                 + 4 * H * T * T * D                 # QK^T + PV (upper bound)
                 + 2 * T * HD * C                    # output projection
                 + 4 * T * C * F4                    # FFN
                 + 12 * T * C)                       # LN / residual misc
    cost = pl.CostEstimate(flops=int(flops),
                           transcendentals=int(B * (H * T * T + 2 * T)),
                           bytes_accessed=int(weight_bytes + 2 * B * T * C * 4))

    kernel = functools.partial(block_kernel, n_heads=H, q_tile=q_tile)

    def run(single_buffer):
        def const_spec(shape, big):
            idx = lambda b: (0,) * len(shape)
            if big and single_buffer:
                # Constant index_map -> never re-fetched; single-buffer to halve VMEM.
                return pl.BlockSpec(shape, idx, pipeline_mode=pl.Buffered(1))
            return pl.BlockSpec(shape, idx)

        in_specs = [
            seq_spec,                                               # x
            const_spec((1, C), False), const_spec((1, C), False),   # ln1 gamma/beta
            const_spec((C, 3 * HD), True),                          # fused Wqkv
            const_spec((H, D, C), True), const_spec((1, C), False), # proj W, b
            const_spec((1, C), False), const_spec((1, C), False),   # ln2 gamma/beta
            const_spec((C, F4), True), const_spec((1, F4), False),  # ffn W1, b1
            const_spec((F4, C), True), const_spec((1, C), False),   # ffn W2, b2
        ]
        return pl.pallas_call(
            kernel,
            out_shape=jax.ShapeDtypeStruct((B, T, C), x.dtype),
            grid=grid,
            in_specs=in_specs,
            out_specs=seq_spec,
            compiler_params=pltpu.CompilerParams(
                dimension_semantics=("parallel",),
                vmem_limit_bytes=vmem_budget),
            cost_estimate=cost,
        )(x,
          fparams["ln1_g"], fparams["ln1_b"],
          fparams["wqkv"],
          fparams["wproj"], fparams["bproj"],
          fparams["ln2_g"], fparams["ln2_b"],
          fparams["w1"], fparams["b1"],
          fparams["w2"], fparams["b2"])

    try:
        return run(single_buffer=True)
    except Exception:
        # Fallback if this JAX build rejects pipeline_mode=pl.Buffered(1);
        # identical semantics, default double-buffered weights.
        return run(single_buffer=False)


def reference_block(x, p):
    """Pure-JAX reference mirroring the PyTorch forward (dropout = identity)."""
    H, C, D = p["wq"].shape
    xn = _layernorm(x, p["ln1_g"][0], p["ln1_b"][0])
    T = x.shape[1]
    mask = jnp.tril(jnp.ones((T, T), dtype=bool))
    heads = []
    for h in range(H):
        q = xn @ p["wq"][h]
        k = xn @ p["wk"][h]
        v = xn @ p["wv"][h]
        wei = (q @ jnp.swapaxes(k, -1, -2)) * (D ** -0.5)
        wei = jnp.where(mask, wei, -jnp.inf)
        wei = jax.nn.softmax(wei, axis=-1)
        heads.append(wei @ v)
    sa = jnp.concatenate(heads, axis=-1) @ p["wproj"] + p["bproj"][0]
    x1 = x + sa
    xn2 = _layernorm(x1, p["ln2_g"][0], p["ln2_b"][0])
    ff = jnp.maximum(xn2 @ p["w1"] + p["b1"][0], 0.0) @ p["w2"] + p["b2"][0]
    return x1 + ff


def init_params(key, n_embed, n_heads):
    head_size = n_embed // n_heads
    keys = jax.random.split(key, 8)
    s = 0.02
    return {
        "ln1_g": jnp.ones((1, n_embed), jnp.float32),
        "ln1_b": jnp.zeros((1, n_embed), jnp.float32),
        "wq": s * jax.random.normal(keys[0], (n_heads, n_embed, head_size), jnp.float32),
        "wk": s * jax.random.normal(keys[1], (n_heads, n_embed, head_size), jnp.float32),
        "wv": s * jax.random.normal(keys[2], (n_heads, n_embed, head_size), jnp.float32),
        "wproj": s * jax.random.normal(keys[3], (n_heads * head_size, n_embed), jnp.float32),
        "bproj": s * jax.random.normal(keys[4], (1, n_embed), jnp.float32),
        "ln2_g": jnp.ones((1, n_embed), jnp.float32),
        "ln2_b": jnp.zeros((1, n_embed), jnp.float32),
        "w1": s * jax.random.normal(keys[5], (n_embed, 4 * n_embed), jnp.float32),
        "b1": jnp.zeros((1, 4 * n_embed), jnp.float32),
        "w2": s * jax.random.normal(keys[6], (4 * n_embed, n_embed), jnp.float32),
        "b2": jnp.zeros((1, n_embed), jnp.float32),
    }


if __name__ == "__main__":
    key = jax.random.PRNGKey(0)
    kx, kp, kx2 = jax.random.split(key, 3)

    # Small GPT block: batch=2, block_size(T)=8, n_embed=32, heads=4, dropout=0.
    B, T, n_embed, n_heads = 2, 8, 32, 4
    x = jax.random.normal(kx, (B, T, n_embed), jnp.float32)
    params = init_params(kp, n_embed, n_heads)
    ref = reference_block(x, params)

    # f32 matmul operands (matches the PyTorch-style reference closely).
    fp_f32 = prepare_block_params(params, compute_dtype=jnp.float32)
    out = jax.block_until_ready(transformer_block(x, fp_f32))
    assert out.shape == (B, T, n_embed)
    assert jnp.allclose(out, ref, atol=2e-3, rtol=2e-3), "f32 kernel mismatch"

    # bf16 matmul operands with f32 accumulation (v6e/v7x MXU fast path).
    fp_bf16 = prepare_block_params(params, compute_dtype=jnp.bfloat16)
    out_bf16 = jax.block_until_ready(transformer_block(x, fp_bf16))
    assert out_bf16.shape == (B, T, n_embed)
    assert jnp.allclose(out_bf16, ref, atol=5e-2, rtol=5e-2), "bf16 kernel mismatch"

    # Exercise the causal query-tiled attention path (bounded score VMEM).
    B2, T2 = 1, 256
    x2 = jax.random.normal(kx2, (B2, T2, n_embed), jnp.float32)
    ref2 = reference_block(x2, params)
    out2 = jax.block_until_ready(transformer_block(x2, fp_f32, q_tile=128))
    assert jnp.allclose(out2, ref2, atol=2e-3, rtol=2e-3), "tiled kernel mismatch"

    print("KERNEL_OK")
</pallas_src>

<mosaic_0001>
module attributes {stable_mosaic.version = 11 : i64} {
  func.func @block_kernel(%arg0: i32, %arg1: memref<2x8x32xf32, #tpu.memory_space<vmem>>, %arg2: memref<1x32xf32, #tpu.memory_space<vmem>>, %arg3: memref<1x32xf32, #tpu.memory_space<vmem>>, %arg4: memref<32x96xf32, #tpu.memory_space<vmem>>, %arg5: memref<4x8x32xf32, #tpu.memory_space<vmem>>, %arg6: memref<1x32xf32, #tpu.memory_space<vmem>>, %arg7: memref<1x32xf32, #tpu.memory_space<vmem>>, %arg8: memref<1x32xf32, #tpu.memory_space<vmem>>, %arg9: memref<32x128xf32, #tpu.memory_space<vmem>>, %arg10: memref<1x128xf32, #tpu.memory_space<vmem>>, %arg11: memref<128x32xf32, #tpu.memory_space<vmem>>, %arg12: memref<1x32xf32, #tpu.memory_space<vmem>>, %arg13: memref<2x8x32xf32, #tpu.memory_space<vmem>>) attributes {dimension_semantics = [#tpu.dimension_semantics<parallel>], iteration_bounds = array<i64: 1>, scalar_prefetch = 0 : i64, scratch_operands = 0 : i64, tpu.core_type = #tpu.core_type<tc>, window_params = [{transform_indices = @transform_0, window_bounds = array<i64: 2, 8, 32>}, {pipeline_mode = #tpu.pipeline_mode<synchronous>, transform_indices = @transform_1, window_bounds = array<i64: 1, 32>}, {pipeline_mode = #tpu.pipeline_mode<synchronous>, transform_indices = @transform_2, window_bounds = array<i64: 1, 32>}, {pipeline_mode = #tpu.pipeline_mode<synchronous>, transform_indices = @transform_3, window_bounds = array<i64: 32, 96>}, {pipeline_mode = #tpu.pipeline_mode<synchronous>, transform_indices = @transform_4, window_bounds = array<i64: 4, 8, 32>}, {pipeline_mode = #tpu.pipeline_mode<synchronous>, transform_indices = @transform_5, window_bounds = array<i64: 1, 32>}, {pipeline_mode = #tpu.pipeline_mode<synchronous>, transform_indices = @transform_6, window_bounds = array<i64: 1, 32>}, {pipeline_mode = #tpu.pipeline_mode<synchronous>, transform_indices = @transform_7, window_bounds = array<i64: 1, 32>}, {pipeline_mode = #tpu.pipeline_mode<synchronous>, transform_indices = @transform_8, window_bounds = array<i64: 32, 128>}, {pipeline_mode = #tpu.pipeline_mode<synchronous>, transform_indices = @transform_9, window_bounds = array<i64: 1, 128>}, {pipeline_mode = #tpu.pipeline_mode<synchronous>, transform_indices = @transform_10, window_bounds = array<i64: 128, 32>}, {pipeline_mode = #tpu.pipeline_mode<synchronous>, transform_indices = @transform_11, window_bounds = array<i64: 1, 32>}, {transform_indices = @transform_12, window_bounds = array<i64: 2, 8, 32>}]} {
    %c0 = arith.constant 0 : index
    %c0_0 = arith.constant 0 : index
    %c0_1 = arith.constant 0 : index
    %0 = vector.load %arg1[%c0, %c0_0, %c0_1] : memref<2x8x32xf32, #tpu.memory_space<vmem>>, vector<2x8x32xf32>
    %1 = vector.shape_cast %0 : vector<2x8x32xf32> to vector<16x32xf32>
    %c0_2 = arith.constant 0 : index
    %c0_3 = arith.constant 0 : index
    %2 = vector.load %arg2[%c0_2, %c0_3] : memref<1x32xf32, #tpu.memory_space<vmem>>, vector<1x32xf32>
    %c0_4 = arith.constant 0 : index
    %c0_5 = arith.constant 0 : index
    %3 = vector.load %arg3[%c0_4, %c0_5] : memref<1x32xf32, #tpu.memory_space<vmem>>, vector<1x32xf32>
    %cst = arith.constant dense<0.000000e+00> : vector<16xf32>
    %4 = vector.multi_reduction <add>, %1, %cst [1] : vector<16x32xf32> to vector<16xf32>
    %5 = vector.shape_cast %4 : vector<16xf32> to vector<16x1xf32>
    %cst_6 = arith.constant 3.200000e+01 : f32
    %6 = vector.broadcast %cst_6 : f32 to vector<16x1xf32>
    %7 = arith.divf %5, %6 : vector<16x1xf32>
    %8 = vector.broadcast %7 : vector<16x1xf32> to vector<16x32xf32>
    %9 = arith.subf %1, %8 : vector<16x32xf32>
    %10 = arith.mulf %9, %9 : vector<16x32xf32>
    %cst_7 = arith.constant dense<0.000000e+00> : vector<16xf32>
    %11 = vector.multi_reduction <add>, %10, %cst_7 [1] : vector<16x32xf32> to vector<16xf32>
    %12 = vector.shape_cast %11 : vector<16xf32> to vector<16x1xf32>
    %cst_8 = arith.constant 3.200000e+01 : f32
    %13 = vector.broadcast %cst_8 : f32 to vector<16x1xf32>
    %14 = arith.divf %12, %13 : vector<16x1xf32>
    %15 = vector.broadcast %7 : vector<16x1xf32> to vector<16x32xf32>
    %16 = arith.subf %1, %15 : vector<16x32xf32>
    %cst_9 = arith.constant 9.99999974E-6 : f32
    %17 = vector.broadcast %cst_9 : f32 to vector<16x1xf32>
    %18 = arith.addf %14, %17 : vector<16x1xf32>
    %19 = math.rsqrt %18 : vector<16x1xf32>
    %20 = vector.broadcast %19 : vector<16x1xf32> to vector<16x32xf32>
    %21 = arith.mulf %16, %20 : vector<16x32xf32>
    %22 = vector.broadcast %2 : vector<1x32xf32> to vector<16x32xf32>
    %23 = arith.mulf %21, %22 : vector<16x32xf32>
    %24 = vector.broadcast %3 : vector<1x32xf32> to vector<16x32xf32>
    %25 = arith.addf %23, %24 : vector<16x32xf32>
    %c0_10 = arith.constant 0 : index
    %c0_11 = arith.constant 0 : index
    %26 = vector.load %arg4[%c0_10, %c0_11] : memref<32x96xf32, #tpu.memory_space<vmem>>, vector<32x96xf32>
    %cst_12 = arith.constant dense<0.000000e+00> : vector<16x96xf32>
    %27 = tpu.matmul %25, %26, %cst_12 {dimension_numbers = #tpu.dot_dimension_numbers<[1], [0], [0], [1], [0, 0, 1, 1], [], []>} : vector<16x32xf32>, vector<32x96xf32>, vector<16x96xf32> -> vector<16x96xf32>
    %28 = vector.shape_cast %27 : vector<16x96xf32> to vector<2x8x96xf32>
    %29 = tpu.iota {dimensions = array<i32: 0>} : vector<8x8xi32>
    %c0_i32 = arith.constant 0 : i32
    %30 = vector.broadcast %c0_i32 : i32 to vector<8x8xi32>
    %31 = arith.addi %29, %30 : vector<8x8xi32>
    %32 = tpu.iota {dimensions = array<i32: 1>} : vector<8x8xi32>
    %33 = arith.cmpi sle, %32, %31 : vector<8x8xi32>
    %cst_13 = arith.constant 0.000000e+00 : f32
    %cst_14 = arith.constant -1.000000e+30 : f32
    %34 = vector.broadcast %cst_13 : f32 to vector<8x8xf32>
    %35 = vector.broadcast %cst_14 : f32 to vector<8x8xf32>
    %36 = arith.select %33, %34, %35 : vector<8x8xi1>, vector<8x8xf32>
    %cst_15 = arith.constant 0.000000e+00 : f32
    %37 = vector.broadcast %cst_15 : f32 to vector<16x32xf32>
    %38 = vector.extract_strided_slice %28 {offsets = [0, 0, 0], sizes = [2, 8, 8], strides = [1, 1, 1]} : vector<2x8x96xf32> to vector<2x8x8xf32>
    %39 = vector.extract_strided_slice %28 {offsets = [0, 0, 32], sizes = [2, 8, 8], strides = [1, 1, 1]} : vector<2x8x96xf32> to vector<2x8x8xf32>
    %40 = vector.extract_strided_slice %28 {offsets = [0, 0, 64], sizes = [2, 8, 8], strides = [1, 1, 1]} : vector<2x8x96xf32> to vector<2x8x8xf32>
    "tpu.trace_start"() <{level = 10 : i32, message = "bqd,bkd->bqk"}> : () -> ()
    %cst_16 = arith.constant dense<0.000000e+00> : vector<2x8x8xf32>
    %41 = tpu.matmul %38, %39, %cst_16 {dimension_numbers = #tpu.dot_dimension_numbers<[2], [2], [1], [1], [0, 0, 0, 1, 1, 1], [0], [0]>} : vector<2x8x8xf32>, vector<2x8x8xf32>, vector<2x8x8xf32> -> vector<2x8x8xf32>
    "tpu.trace_stop"() : () -> ()
    %42 = vector.shape_cast %36 : vector<8x8xf32> to vector<1x8x8xf32>
    %43 = vector.broadcast %42 : vector<1x8x8xf32> to vector<2x8x8xf32>
    %44 = arith.addf %41, %43 : vector<2x8x8xf32>
    %cst_17 = arith.constant dense<0xFF800000> : vector<2x8xf32>
    %45 = vector.multi_reduction <maximumf>, %44, %cst_17 [2] : vector<2x8x8xf32> to vector<2x8xf32>
    %46 = vector.shape_cast %45 : vector<2x8xf32> to vector<2x8x1xf32>
    %47 = vector.broadcast %46 : vector<2x8x1xf32> to vector<2x8x8xf32>
    %48 = arith.subf %44, %47 : vector<2x8x8xf32>
    %49 = math.exp %48 : vector<2x8x8xf32>
    %cst_18 = arith.constant dense<0.000000e+00> : vector<2x8xf32>
    %50 = vector.multi_reduction <add>, %49, %cst_18 [2] : vector<2x8x8xf32> to vector<2x8xf32>
    %51 = vector.shape_cast %50 : vector<2x8xf32> to vector<2x8x1xf32>
    "tpu.trace_start"() <{level = 10 : i32, message = "bqk,bkd->bqd"}> : () -> ()
    %cst_19 = arith.constant dense<0.000000e+00> : vector<2x8x8xf32>
    %52 = tpu.matmul %49, %40, %cst_19 {dimension_numbers = #tpu.dot_dimension_numbers<[2], [1], [1], [2], [0, 0, 0, 1, 1, 2], [0], [0]>} : vector<2x8x8xf32>, vector<2x8x8xf32>, vector<2x8x8xf32> -> vector<2x8x8xf32>
    "tpu.trace_stop"() : () -> ()
    %53 = vector.broadcast %51 : vector<2x8x1xf32> to vector<2x8x8xf32>
    %54 = arith.divf %52, %53 : vector<2x8x8xf32>
    %55 = vector.shape_cast %54 : vector<2x8x8xf32> to vector<16x8xf32>
    %c0_20 = arith.constant 0 : index
    %c0_21 = arith.constant 0 : index
    %c0_22 = arith.constant 0 : index
    %56 = vector.load %arg5[%c0_20, %c0_21, %c0_22] : memref<4x8x32xf32, #tpu.memory_space<vmem>>, vector<1x8x32xf32>
    %57 = vector.shape_cast %56 : vector<1x8x32xf32> to vector<8x32xf32>
    %cst_23 = arith.constant dense<0.000000e+00> : vector<16x32xf32>
    %58 = tpu.matmul %55, %57, %cst_23 {dimension_numbers = #tpu.dot_dimension_numbers<[1], [0], [0], [1], [0, 0, 1, 1], [], []>} : vector<16x8xf32>, vector<8x32xf32>, vector<16x32xf32> -> vector<16x32xf32>
    %59 = arith.addf %37, %58 : vector<16x32xf32>
    %60 = vector.extract_strided_slice %28 {offsets = [0, 0, 8], sizes = [2, 8, 8], strides = [1, 1, 1]} : vector<2x8x96xf32> to vector<2x8x8xf32>
    %61 = vector.extract_strided_slice %28 {offsets = [0, 0, 40], sizes = [2, 8, 8], strides = [1, 1, 1]} : vector<2x8x96xf32> to vector<2x8x8xf32>
    %62 = vector.extract_strided_slice %28 {offsets = [0, 0, 72], sizes = [2, 8, 8], strides = [1, 1, 1]} : vector<2x8x96xf32> to vector<2x8x8xf32>
    "tpu.trace_start"() <{level = 10 : i32, message = "bqd,bkd->bqk"}> : () -> ()
    %cst_24 = arith.constant dense<0.000000e+00> : vector<2x8x8xf32>
    %63 = tpu.matmul %60, %61, %cst_24 {dimension_numbers = #tpu.dot_dimension_numbers<[2], [2], [1], [1], [0, 0, 0, 1, 1, 1], [0], [0]>} : vector<2x8x8xf32>, vector<2x8x8xf32>, vector<2x8x8xf32> -> vector<2x8x8xf32>
    "tpu.trace_stop"() : () -> ()
    %64 = vector.shape_cast %36 : vector<8x8xf32> to vector<1x8x8xf32>
    %65 = vector.broadcast %64 : vector<1x8x8xf32> to vector<2x8x8xf32>
    %66 = arith.addf %63, %65 : vector<2x8x8xf32>
    %cst_25 = arith.constant dense<0xFF800000> : vector<2x8xf32>
    %67 = vector.multi_reduction <maximumf>, %66, %cst_25 [2] : vector<2x8x8xf32> to vector<2x8xf32>
    %68 = vector.shape_cast %67 : vector<2x8xf32> to vector<2x8x1xf32>
    %69 = vector.broadcast %68 : vector<2x8x1xf32> to vector<2x8x8xf32>
    %70 = arith.subf %66, %69 : vector<2x8x8xf32>
    %71 = math.exp %70 : vector<2x8x8xf32>
    %cst_26 = arith.constant dense<0.000000e+00> : vector<2x8xf32>
    %72 = vector.multi_reduction <add>, %71, %cst_26 [2] : vector<2x8x8xf32> to vector<2x8xf32>
    %73 = vector.shape_cast %72 : vector<2x8xf32> to vector<2x8x1xf32>
    "tpu.trace_start"() <{level = 10 : i32, message = "bqk,bkd->bqd"}> : () -> ()
    %cst_27 = arith.constant dense<0.000000e+00> : vector<2x8x8xf32>
    %74 = tpu.matmul %71, %62, %cst_27 {dimension_numbers = #tpu.dot_dimension_numbers<[2], [1], [1], [2], [0, 0, 0, 1, 1, 2], [0], [0]>} : vector<2x8x8xf32>, vector<2x8x8xf32>, vector<2x8x8xf32> -> vector<2x8x8xf32>
    "tpu.trace_stop"() : () -> ()
    %75 = vector.broadcast %73 : vector<2x8x1xf32> to vector<2x8x8xf32>
    %76 = arith.divf %74, %75 : vector<2x8x8xf32>
    %77 = vector.shape_cast %76 : vector<2x8x8xf32> to vector<16x8xf32>
    %c1 = arith.constant 1 : index
    %c0_28 = arith.constant 0 : index
    %c0_29 = arith.constant 0 : index
    %78 = vector.load %arg5[%c1, %c0_28, %c0_29] : memref<4x8x32xf32, #tpu.memory_space<vmem>>, vector<1x8x32xf32>
    %79 = vector.shape_cast %78 : vector<1x8x32xf32> to vector<8x32xf32>
    %cst_30 = arith.constant dense<0.000000e+00> : vector<16x32xf32>
    %80 = tpu.matmul %77, %79, %cst_30 {dimension_numbers = #tpu.dot_dimension_numbers<[1], [0], [0], [1], [0, 0, 1, 1], [], []>} : vector<16x8xf32>, vector<8x32xf32>, vector<16x32xf32> -> vector<16x32xf32>
    %81 = arith.addf %59, %80 : vector<16x32xf32>
    %82 = vector.extract_strided_slice %28 {offsets = [0, 0, 16], sizes = [2, 8, 8], strides = [1, 1, 1]} : vector<2x8x96xf32> to vector<2x8x8xf32>
    %83 = vector.extract_strided_slice %28 {offsets = [0, 0, 48], sizes = [2, 8, 8], strides = [1, 1, 1]} : vector<2x8x96xf32> to vector<2x8x8xf32>
    %84 = vector.extract_strided_slice %28 {offsets = [0, 0, 80], sizes = [2, 8, 8], strides = [1, 1, 1]} : vector<2x8x96xf32> to vector<2x8x8xf32>
    "tpu.trace_start"() <{level = 10 : i32, message = "bqd,bkd->bqk"}> : () -> ()
    %cst_31 = arith.constant dense<0.000000e+00> : vector<2x8x8xf32>
    %85 = tpu.matmul %82, %83, %cst_31 {dimension_numbers = #tpu.dot_dimension_numbers<[2], [2], [1], [1], [0, 0, 0, 1, 1, 1], [0], [0]>} : vector<2x8x8xf32>, vector<2x8x8xf32>, vector<2x8x8xf32> -> vector<2x8x8xf32>
    "tpu.trace_stop"() : () -> ()
    %86 = vector.shape_cast %36 : vector<8x8xf32> to vector<1x8x8xf32>
    %87 = vector.broadcast %86 : vector<1x8x8xf32> to vector<2x8x8xf32>
    %88 = arith.addf %85, %87 : vector<2x8x8xf32>
    %cst_32 = arith.constant dense<0xFF800000> : vector<2x8xf32>
    %89 = vector.multi_reduction <maximumf>, %88, %cst_32 [2] : vector<2x8x8xf32> to vector<2x8xf32>
    %90 = vector.shape_cast %89 : vector<2x8xf32> to vector<2x8x1xf32>
    %91 = vector.broadcast %90 : vector<2x8x1xf32> to vector<2x8x8xf32>
    %92 = arith.subf %88, %91 : vector<2x8x8xf32>
    %93 = math.exp %92 : vector<2x8x8xf32>
    %cst_33 = arith.constant dense<0.000000e+00> : vector<2x8xf32>
    %94 = vector.multi_reduction <add>, %93, %cst_33 [2] : vector<2x8x8xf32> to vector<2x8xf32>
    %95 = vector.shape_cast %94 : vector<2x8xf32> to vector<2x8x1xf32>
    "tpu.trace_start"() <{level = 10 : i32, message = "bqk,bkd->bqd"}> : () -> ()
    %cst_34 = arith.constant dense<0.000000e+00> : vector<2x8x8xf32>
    %96 = tpu.matmul %93, %84, %cst_34 {dimension_numbers = #tpu.dot_dimension_numbers<[2], [1], [1], [2], [0, 0, 0, 1, 1, 2], [0], [0]>} : vector<2x8x8xf32>, vector<2x8x8xf32>, vector<2x8x8xf32> -> vector<2x8x8xf32>
    "tpu.trace_stop"() : () -> ()
    %97 = vector.broadcast %95 : vector<2x8x1xf32> to vector<2x8x8xf32>
    %98 = arith.divf %96, %97 : vector<2x8x8xf32>
    %99 = vector.shape_cast %98 : vector<2x8x8xf32> to vector<16x8xf32>
    %c2 = arith.constant 2 : index
    %c0_35 = arith.constant 0 : index
    %c0_36 = arith.constant 0 : index
    %100 = vector.load %arg5[%c2, %c0_35, %c0_36] : memref<4x8x32xf32, #tpu.memory_space<vmem>>, vector<1x8x32xf32>
    %101 = vector.shape_cast %100 : vector<1x8x32xf32> to vector<8x32xf32>
    %cst_37 = arith.constant dense<0.000000e+00> : vector<16x32xf32>
    %102 = tpu.matmul %99, %101, %cst_37 {dimension_numbers = #tpu.dot_dimension_numbers<[1], [0], [0], [1], [0, 0, 1, 1], [], []>} : vector<16x8xf32>, vector<8x32xf32>, vector<16x32xf32> -> vector<16x32xf32>
    %103 = arith.addf %81, %102 : vector<16x32xf32>
    %104 = vector.extract_strided_slice %28 {offsets = [0, 0, 24], sizes = [2, 8, 8], strides = [1, 1, 1]} : vector<2x8x96xf32> to vector<2x8x8xf32>
    %105 = vector.extract_strided_slice %28 {offsets = [0, 0, 56], sizes = [2, 8, 8], strides = [1, 1, 1]} : vector<2x8x96xf32> to vector<2x8x8xf32>
    %106 = vector.extract_strided_slice %28 {offsets = [0, 0, 88], sizes = [2, 8, 8], strides = [1, 1, 1]} : vector<2x8x96xf32> to vector<2x8x8xf32>
    "tpu.trace_start"() <{level = 10 : i32, message = "bqd,bkd->bqk"}> : () -> ()
    %cst_38 = arith.constant dense<0.000000e+00> : vector<2x8x8xf32>
    %107 = tpu.matmul %104, %105, %cst_38 {dimension_numbers = #tpu.dot_dimension_numbers<[2], [2], [1], [1], [0, 0, 0, 1, 1, 1], [0], [0]>} : vector<2x8x8xf32>, vector<2x8x8xf32>, vector<2x8x8xf32> -> vector<2x8x8xf32>
    "tpu.trace_stop"() : () -> ()
    %108 = vector.shape_cast %36 : vector<8x8xf32> to vector<1x8x8xf32>
    %109 = vector.broadcast %108 : vector<1x8x8xf32> to vector<2x8x8xf32>
    %110 = arith.addf %107, %109 : vector<2x8x8xf32>
    %cst_39 = arith.constant dense<0xFF800000> : vector<2x8xf32>
    %111 = vector.multi_reduction <maximumf>, %110, %cst_39 [2] : vector<2x8x8xf32> to vector<2x8xf32>
    %112 = vector.shape_cast %111 : vector<2x8xf32> to vector<2x8x1xf32>
    %113 = vector.broadcast %112 : vector<2x8x1xf32> to vector<2x8x8xf32>
    %114 = arith.subf %110, %113 : vector<2x8x8xf32>
    %115 = math.exp %114 : vector<2x8x8xf32>
    %cst_40 = arith.constant dense<0.000000e+00> : vector<2x8xf32>
    %116 = vector.multi_reduction <add>, %115, %cst_40 [2] : vector<2x8x8xf32> to vector<2x8xf32>
    %117 = vector.shape_cast %116 : vector<2x8xf32> to vector<2x8x1xf32>
    "tpu.trace_start"() <{level = 10 : i32, message = "bqk,bkd->bqd"}> : () -> ()
    %cst_41 = arith.constant dense<0.000000e+00> : vector<2x8x8xf32>
    %118 = tpu.matmul %115, %106, %cst_41 {dimension_numbers = #tpu.dot_dimension_numbers<[2], [1], [1], [2], [0, 0, 0, 1, 1, 2], [0], [0]>} : vector<2x8x8xf32>, vector<2x8x8xf32>, vector<2x8x8xf32> -> vector<2x8x8xf32>
    "tpu.trace_stop"() : () -> ()
    %119 = vector.broadcast %117 : vector<2x8x1xf32> to vector<2x8x8xf32>
    %120 = arith.divf %118, %119 : vector<2x8x8xf32>
    %121 = vector.shape_cast %120 : vector<2x8x8xf32> to vector<16x8xf32>
    %c3 = arith.constant 3 : index
    %c0_42 = arith.constant 0 : index
    %c0_43 = arith.constant 0 : index
    %122 = vector.load %arg5[%c3, %c0_42, %c0_43] : memref<4x8x32xf32, #tpu.memory_space<vmem>>, vector<1x8x32xf32>
    %123 = vector.shape_cast %122 : vector<1x8x32xf32> to vector<8x32xf32>
    %cst_44 = arith.constant dense<0.000000e+00> : vector<16x32xf32>
    %124 = tpu.matmul %121, %123, %cst_44 {dimension_numbers = #tpu.dot_dimension_numbers<[1], [0], [0], [1], [0, 0, 1, 1], [], []>} : vector<16x8xf32>, vector<8x32xf32>, vector<16x32xf32> -> vector<16x32xf32>
    %125 = arith.addf %103, %124 : vector<16x32xf32>
    %126 = arith.addf %1, %125 : vector<16x32xf32>
    %c0_45 = arith.constant 0 : index
    %c0_46 = arith.constant 0 : index
    %127 = vector.load %arg6[%c0_45, %c0_46] : memref<1x32xf32, #tpu.memory_space<vmem>>, vector<1x32xf32>
    %128 = vector.broadcast %127 : vector<1x32xf32> to vector<16x32xf32>
    %129 = arith.addf %126, %128 : vector<16x32xf32>
    %c0_47 = arith.constant 0 : index
    %c0_48 = arith.constant 0 : index
    %130 = vector.load %arg7[%c0_47, %c0_48] : memref<1x32xf32, #tpu.memory_space<vmem>>, vector<1x32xf32>
    %c0_49 = arith.constant 0 : index
    %c0_50 = arith.constant 0 : index
    %131 = vector.load %arg8[%c0_49, %c0_50] : memref<1x32xf32, #tpu.memory_space<vmem>>, vector<1x32xf32>
    %cst_51 = arith.constant dense<0.000000e+00> : vector<16xf32>
    %132 = vector.multi_reduction <add>, %129, %cst_51 [1] : vector<16x32xf32> to vector<16xf32>
    %133 = vector.shape_cast %132 : vector<16xf32> to vector<16x1xf32>
    %cst_52 = arith.constant 3.200000e+01 : f32
    %134 = vector.broadcast %cst_52 : f32 to vector<16x1xf32>
    %135 = arith.divf %133, %134 : vector<16x1xf32>
    %136 = vector.broadcast %135 : vector<16x1xf32> to vector<16x32xf32>
    %137 = arith.subf %129, %136 : vector<16x32xf32>
    %138 = arith.mulf %137, %137 : vector<16x32xf32>
    %cst_53 = arith.constant dense<0.000000e+00> : vector<16xf32>
    %139 = vector.multi_reduction <add>, %138, %cst_53 [1] : vector<16x32xf32> to vector<16xf32>
    %140 = vector.shape_cast %139 : vector<16xf32> to vector<16x1xf32>
    %cst_54 = arith.constant 3.200000e+01 : f32
    %141 = vector.broadcast %cst_54 : f32 to vector<16x1xf32>
    %142 = arith.divf %140, %141 : vector<16x1xf32>
    %143 = vector.broadcast %135 : vector<16x1xf32> to vector<16x32xf32>
    %144 = arith.subf %129, %143 : vector<16x32xf32>
    %cst_55 = arith.constant 9.99999974E-6 : f32
    %145 = vector.broadcast %cst_55 : f32 to vector<16x1xf32>
    %146 = arith.addf %142, %145 : vector<16x1xf32>
    %147 = math.rsqrt %146 : vector<16x1xf32>
    %148 = vector.broadcast %147 : vector<16x1xf32> to vector<16x32xf32>
    %149 = arith.mulf %144, %148 : vector<16x32xf32>
    %150 = vector.broadcast %130 : vector<1x32xf32> to vector<16x32xf32>
    %151 = arith.mulf %149, %150 : vector<16x32xf32>
    %152 = vector.broadcast %131 : vector<1x32xf32> to vector<16x32xf32>
    %153 = arith.addf %151, %152 : vector<16x32xf32>
    %c0_56 = arith.constant 0 : index
    %c0_57 = arith.constant 0 : index
    %154 = vector.load %arg9[%c0_56, %c0_57] : memref<32x128xf32, #tpu.memory_space<vmem>>, vector<32x128xf32>
    %cst_58 = arith.constant dense<0.000000e+00> : vector<16x128xf32>
    %155 = tpu.matmul %153, %154, %cst_58 {dimension_numbers = #tpu.dot_dimension_numbers<[1], [0], [0], [1], [0, 0, 1, 1], [], []>} : vector<16x32xf32>, vector<32x128xf32>, vector<16x128xf32> -> vector<16x128xf32>
    %c0_59 = arith.constant 0 : index
    %c0_60 = arith.constant 0 : index
    %156 = vector.load %arg10[%c0_59, %c0_60] : memref<1x128xf32, #tpu.memory_space<vmem>>, vector<1x128xf32>
    %157 = vector.broadcast %156 : vector<1x128xf32> to vector<16x128xf32>
    %158 = arith.addf %155, %157 : vector<16x128xf32>
    %cst_61 = arith.constant 0.000000e+00 : f32
    %159 = vector.broadcast %cst_61 : f32 to vector<16x128xf32>
    %160 = arith.maximumf %158, %159 : vector<16x128xf32>
    %c0_62 = arith.constant 0 : index
    %c0_63 = arith.constant 0 : index
    %161 = vector.load %arg11[%c0_62, %c0_63] : memref<128x32xf32, #tpu.memory_space<vmem>>, vector<128x32xf32>
    %cst_64 = arith.constant dense<0.000000e+00> : vector<16x32xf32>
    %162 = tpu.matmul %160, %161, %cst_64 {dimension_numbers = #tpu.dot_dimension_numbers<[1], [0], [0], [1], [0, 0, 1, 1], [], []>} : vector<16x128xf32>, vector<128x32xf32>, vector<16x32xf32> -> vector<16x32xf32>
    %c0_65 = arith.constant 0 : index
    %c0_66 = arith.constant 0 : index
    %163 = vector.load %arg12[%c0_65, %c0_66] : memref<1x32xf32, #tpu.memory_space<vmem>>, vector<1x32xf32>
    %164 = vector.broadcast %163 : vector<1x32xf32> to vector<16x32xf32>
    %165 = arith.addf %162, %164 : vector<16x32xf32>
    %166 = arith.addf %129, %165 : vector<16x32xf32>
    %167 = vector.shape_cast %166 : vector<16x32xf32> to vector<2x8x32xf32>
    %c0_67 = arith.constant 0 : index
    %c0_68 = arith.constant 0 : index
    %c0_69 = arith.constant 0 : index
    %168 = vector.load %arg13[%c0_67, %c0_68, %c0_69] : memref<2x8x32xf32, #tpu.memory_space<vmem>>, vector<2x8x32xf32>
    tpu.vector_store %arg13[%c0_67, %c0_68, %c0_69], %167 {strides = array<i32>} : memref<2x8x32xf32, #tpu.memory_space<vmem>>, vector<2x8x32xf32>,
    return
  }
  func.func @transform_0(%arg0: i32) -> (i32, i32, i32) {
    %c0_i32 = arith.constant 0 : i32
    %c0_i32_0 = arith.constant 0 : i32
    %c0_i32_1 = arith.constant 0 : i32
    return %arg0, %c0_i32, %c0_i32_0 : i32, i32, i32
  }
  func.func @transform_1(%arg0: i32) -> (i32, i32) {
    %c0_i32 = arith.constant 0 : i32
    %c0_i32_0 = arith.constant 0 : i32
    %c0_i32_1 = arith.constant 0 : i32
    return %c0_i32, %c0_i32_0 : i32, i32
  }
  func.func @transform_2(%arg0: i32) -> (i32, i32) {
    %c0_i32 = arith.constant 0 : i32
    %c0_i32_0 = arith.constant 0 : i32
    %c0_i32_1 = arith.constant 0 : i32
    return %c0_i32, %c0_i32_0 : i32, i32
  }
  func.func @transform_3(%arg0: i32) -> (i32, i32) {
    %c0_i32 = arith.constant 0 : i32
    %c0_i32_0 = arith.constant 0 : i32
    %c0_i32_1 = arith.constant 0 : i32
    return %c0_i32, %c0_i32_0 : i32, i32
  }
  func.func @transform_4(%arg0: i32) -> (i32, i32, i32) {
    %c0_i32 = arith.constant 0 : i32
    %c0_i32_0 = arith.constant 0 : i32
    %c0_i32_1 = arith.constant 0 : i32
    %c0_i32_2 = arith.constant 0 : i32
    return %c0_i32, %c0_i32_0, %c0_i32_1 : i32, i32, i32
  }
  func.func @transform_5(%arg0: i32) -> (i32, i32) {
    %c0_i32 = arith.constant 0 : i32
    %c0_i32_0 = arith.constant 0 : i32
    %c0_i32_1 = arith.constant 0 : i32
    return %c0_i32, %c0_i32_0 : i32, i32
  }
  func.func @transform_6(%arg0: i32) -> (i32, i32) {
    %c0_i32 = arith.constant 0 : i32
    %c0_i32_0 = arith.constant 0 : i32
    %c0_i32_1 = arith.constant 0 : i32
    return %c0_i32, %c0_i32_0 : i32, i32
  }
  func.func @transform_7(%arg0: i32) -> (i32, i32) {
    %c0_i32 = arith.constant 0 : i32
    %c0_i32_0 = arith.constant 0 : i32
    %c0_i32_1 = arith.constant 0 : i32
    return %c0_i32, %c0_i32_0 : i32, i32
  }
  func.func @transform_8(%arg0: i32) -> (i32, i32) {
    %c0_i32 = arith.constant 0 : i32
    %c0_i32_0 = arith.constant 0 : i32
    %c0_i32_1 = arith.constant 0 : i32
    return %c0_i32, %c0_i32_0 : i32, i32
  }
  func.func @transform_9(%arg0: i32) -> (i32, i32) {
    %c0_i32 = arith.constant 0 : i32
    %c0_i32_0 = arith.constant 0 : i32
    %c0_i32_1 = arith.constant 0 : i32
    return %c0_i32, %c0_i32_0 : i32, i32
  }
  func.func @transform_10(%arg0: i32) -> (i32, i32) {
    %c0_i32 = arith.constant 0 : i32
    %c0_i32_0 = arith.constant 0 : i32
    %c0_i32_1 = arith.constant 0 : i32
    return %c0_i32, %c0_i32_0 : i32, i32
  }
  func.func @transform_11(%arg0: i32) -> (i32, i32) {
    %c0_i32 = arith.constant 0 : i32
    %c0_i32_0 = arith.constant 0 : i32
    %c0_i32_1 = arith.constant 0 : i32
    return %c0_i32, %c0_i32_0 : i32, i32
  }
  func.func @transform_12(%arg0: i32) -> (i32, i32, i32) {
    %c0_i32 = arith.constant 0 : i32
    %c0_i32_0 = arith.constant 0 : i32
    %c0_i32_1 = arith.constant 0 : i32
    return %arg0, %c0_i32, %c0_i32_0 : i32, i32, i32
  }
}

module attributes {stable_mosaic.version = 11 : i64} {
  func.func @block_kernel(%arg0: i32, %arg1: memref<2x8x32xf32, #tpu.memory_space<vmem>>, %arg2: memref<1x32xf32, #tpu.memory_space<vmem>>, %arg3: memref<1x32xf32, #tpu.memory_space<vmem>>, %arg4: memref<32x96xf32, #tpu.memory_space<vmem>>, %arg5: memref<4x8x32xf32, #tpu.memory_space<vmem>>, %arg6: memref<1x32xf32, #tpu.memory_space<vmem>>, %arg7: memref<1x32xf32, #tpu.memory_space<vmem>>, %arg8: memref<1x32xf32, #tpu.memory_space<vmem>>, %arg9: memref<32x128xf32, #tpu.memory_space<vmem>>, %arg10: memref<1x128xf32, #tpu.memory_space<vmem>>, %arg11: memref<128x32xf32, #tpu.memory_space<vmem>>, %arg12: memref<1x32xf32, #tpu.memory_space<vmem>>, %arg13: memref<2x8x32xf32, #tpu.memory_space<vmem>>) attributes {dimension_semantics = [#tpu.dimension_semantics<parallel>], iteration_bounds = array<i64: 1>, scalar_prefetch = 0 : i64, scratch_operands = 0 : i64, tpu.core_type = #tpu.core_type<tc>, window_params = [{transform_indices = @transform_0, window_bounds = array<i64: 2, 8, 32>}, {pipeline_mode = #tpu.pipeline_mode<synchronous>, transform_indices = @transform_1, window_bounds = array<i64: 1, 32>}, {pipeline_mode = #tpu.pipeline_mode<synchronous>, transform_indices = @transform_2, window_bounds = array<i64: 1, 32>}, {pipeline_mode = #tpu.pipeline_mode<synchronous>, transform_indices = @transform_3, window_bounds = array<i64: 32, 96>}, {pipeline_mode = #tpu.pipeline_mode<synchronous>, transform_indices = @transform_4, window_bounds = array<i64: 4, 8, 32>}, {pipeline_mode = #tpu.pipeline_mode<synchronous>, transform_indices = @transform_5, window_bounds = array<i64: 1, 32>}, {pipeline_mode = #tpu.pipeline_mode<synchronous>, transform_indices = @transform_6, window_bounds = array<i64: 1, 32>}, {pipeline_mode = #tpu.pipeline_mode<synchronous>, transform_indices = @transform_7, window_bounds = array<i64: 1, 32>}, {pipeline_mode = #tpu.pipeline_mode<synchronous>, transform_indices = @transform_8, window_bounds = array<i64: 32, 128>}, {pipeline_mode = #tpu.pipeline_mode<synchronous>, transform_indices = @transform_9, window_bounds = array<i64: 1, 128>}, {pipeline_mode = #tpu.pipeline_mode<synchronous>, transform_indices = @transform_10, window_bounds = array<i64: 128, 32>}, {pipeline_mode = #tpu.pipeline_mode<synchronous>, transform_indices = @transform_11, window_bounds = array<i64: 1, 32>}, {transform_indices = @transform_12, window_bounds = array<i64: 2, 8, 32>}]} {
    %c0 = arith.constant 0 : index
    %c0_0 = arith.constant 0 : index
    %c0_1 = arith.constant 0 : index
    %0 = vector.load %arg1[%c0, %c0_0, %c0_1] : memref<2x8x32xf32, #tpu.memory_space<vmem>>, vector<2x8x32xf32>
    %1 = vector.shape_cast %0 : vector<2x8x32xf32> to vector<16x32xf32>
    %c0_2 = arith.constant 0 : index
    %c0_3 = arith.constant 0 : index
    %2 = vector.load %arg2[%c0_2, %c0_3] : memref<1x32xf32, #tpu.memory_space<vmem>>, vector<1x32xf32>
    %c0_4 = arith.constant 0 : index
    %c0_5 = arith.constant 0 : index
    %3 = vector.load %arg3[%c0_4, %c0_5] : memref<1x32xf32, #tpu.memory_space<vmem>>, vector<1x32xf32>
    %cst = arith.constant dense<0.000000e+00> : vector<16xf32>
    %4 = vector.multi_reduction <add>, %1, %cst [1] : vector<16x32xf32> to vector<16xf32>
    %5 = vector.shape_cast %4 : vector<16xf32> to vector<16x1xf32>
    %cst_6 = arith.constant 3.200000e+01 : f32
    %6 = vector.broadcast %cst_6 : f32 to vector<16x1xf32>
    %7 = arith.divf %5, %6 : vector<16x1xf32>
    %8 = vector.broadcast %7 : vector<16x1xf32> to vector<16x32xf32>
    %9 = arith.subf %1, %8 : vector<16x32xf32>
    %10 = arith.mulf %9, %9 : vector<16x32xf32>
    %cst_7 = arith.constant dense<0.000000e+00> : vector<16xf32>
    %11 = vector.multi_reduction <add>, %10, %cst_7 [1] : vector<16x32xf32> to vector<16xf32>
    %12 = vector.shape_cast %11 : vector<16xf32> to vector<16x1xf32>
    %cst_8 = arith.constant 3.200000e+01 : f32
    %13 = vector.broadcast %cst_8 : f32 to vector<16x1xf32>
    %14 = arith.divf %12, %13 : vector<16x1xf32>
    %15 = vector.broadcast %7 : vector<16x1xf32> to vector<16x32xf32>
    %16 = arith.subf %1, %15 : vector<16x32xf32>
    %cst_9 = arith.constant 9.99999974E-6 : f32
    %17 = vector.broadcast %cst_9 : f32 to vector<16x1xf32>
    %18 = arith.addf %14, %17 : vector<16x1xf32>
    %19 = math.rsqrt %18 : vector<16x1xf32>
    %20 = vector.broadcast %19 : vector<16x1xf32> to vector<16x32xf32>
    %21 = arith.mulf %16, %20 : vector<16x32xf32>
    %22 = vector.broadcast %2 : vector<1x32xf32> to vector<16x32xf32>
    %23 = arith.mulf %21, %22 : vector<16x32xf32>
    %24 = vector.broadcast %3 : vector<1x32xf32> to vector<16x32xf32>
    %25 = arith.addf %23, %24 : vector<16x32xf32>
    %c0_10 = arith.constant 0 : index
    %c0_11 = arith.constant 0 : index
    %26 = vector.load %arg4[%c0_10, %c0_11] : memref<32x96xf32, #tpu.memory_space<vmem>>, vector<32x96xf32>
    %cst_12 = arith.constant dense<0.000000e+00> : vector<16x96xf32>
    %27 = tpu.matmul %25, %26, %cst_12 {dimension_numbers = #tpu.dot_dimension_numbers<[1], [0], [0], [1], [0, 0, 1, 1], [], []>} : vector<16x32xf32>, vector<32x96xf32>, vector<16x96xf32> -> vector<16x96xf32>
    %28 = vector.shape_cast %27 : vector<16x96xf32> to vector<2x8x96xf32>
    %29 = tpu.iota {dimensions = array<i32: 0>} : vector<8x8xi32>
    %c0_i32 = arith.constant 0 : i32
    %30 = vector.broadcast %c0_i32 : i32 to vector<8x8xi32>
    %31 = arith.addi %29, %30 : vector<8x8xi32>
    %32 = tpu.iota {dimensions = array<i32: 1>} : vector<8x8xi32>
    %33 = arith.cmpi sle, %32, %31 : vector<8x8xi32>
    %cst_13 = arith.constant 0.000000e+00 : f32
    %cst_14 = arith.constant -1.000000e+30 : f32
    %34 = vector.broadcast %cst_13 : f32 to vector<8x8xf32>
    %35 = vector.broadcast %cst_14 : f32 to vector<8x8xf32>
    %36 = arith.select %33, %34, %35 : vector<8x8xi1>, vector<8x8xf32>
    %cst_15 = arith.constant 0.000000e+00 : f32
    %37 = vector.broadcast %cst_15 : f32 to vector<16x32xf32>
    %38 = vector.extract_strided_slice %28 {offsets = [0, 0, 0], sizes = [2, 8, 8], strides = [1, 1, 1]} : vector<2x8x96xf32> to vector<2x8x8xf32>
    %39 = vector.extract_strided_slice %28 {offsets = [0, 0, 32], sizes = [2, 8, 8], strides = [1, 1, 1]} : vector<2x8x96xf32> to vector<2x8x8xf32>
    %40 = vector.extract_strided_slice %28 {offsets = [0, 0, 64], sizes = [2, 8, 8], strides = [1, 1, 1]} : vector<2x8x96xf32> to vector<2x8x8xf32>
    "tpu.trace_start"() <{level = 10 : i32, message = "bqd,bkd->bqk"}> : () -> ()
    %cst_16 = arith.constant dense<0.000000e+00> : vector<2x8x8xf32>
    %41 = tpu.matmul %38, %39, %cst_16 {dimension_numbers = #tpu.dot_dimension_numbers<[2], [2], [1], [1], [0, 0, 0, 1, 1, 1], [0], [0]>} : vector<2x8x8xf32>, vector<2x8x8xf32>, vector<2x8x8xf32> -> vector<2x8x8xf32>
    "tpu.trace_stop"() : () -> ()
    %42 = vector.shape_cast %36 : vector<8x8xf32> to vector<1x8x8xf32>
    %43 = vector.broadcast %42 : vector<1x8x8xf32> to vector<2x8x8xf32>
    %44 = arith.addf %41, %43 : vector<2x8x8xf32>
    %cst_17 = arith.constant dense<0xFF800000> : vector<2x8xf32>
    %45 = vector.multi_reduction <maximumf>, %44, %cst_17 [2] : vector<2x8x8xf32> to vector<2x8xf32>
    %46 = vector.shape_cast %45 : vector<2x8xf32> to vector<2x8x1xf32>
    %47 = vector.broadcast %46 : vector<2x8x1xf32> to vector<2x8x8xf32>
    %48 = arith.subf %44, %47 : vector<2x8x8xf32>
    %49 = math.exp %48 : vector<2x8x8xf32>
    %cst_18 = arith.constant dense<0.000000e+00> : vector<2x8xf32>
    %50 = vector.multi_reduction <add>, %49, %cst_18 [2] : vector<2x8x8xf32> to vector<2x8xf32>
    %51 = vector.shape_cast %50 : vector<2x8xf32> to vector<2x8x1xf32>
    "tpu.trace_start"() <{level = 10 : i32, message = "bqk,bkd->bqd"}> : () -> ()
    %cst_19 = arith.constant dense<0.000000e+00> : vector<2x8x8xf32>
    %52 = tpu.matmul %49, %40, %cst_19 {dimension_numbers = #tpu.dot_dimension_numbers<[2], [1], [1], [2], [0, 0, 0, 1, 1, 2], [0], [0]>} : vector<2x8x8xf32>, vector<2x8x8xf32>, vector<2x8x8xf32> -> vector<2x8x8xf32>
    "tpu.trace_stop"() : () -> ()
    %53 = vector.broadcast %51 : vector<2x8x1xf32> to vector<2x8x8xf32>
    %54 = arith.divf %52, %53 : vector<2x8x8xf32>
    %55 = vector.shape_cast %54 : vector<2x8x8xf32> to vector<16x8xf32>
    %c0_20 = arith.constant 0 : index
    %c0_21 = arith.constant 0 : index
    %c0_22 = arith.constant 0 : index
    %56 = vector.load %arg5[%c0_20, %c0_21, %c0_22] : memref<4x8x32xf32, #tpu.memory_space<vmem>>, vector<1x8x32xf32>
    %57 = vector.shape_cast %56 : vector<1x8x32xf32> to vector<8x32xf32>
    %cst_23 = arith.constant dense<0.000000e+00> : vector<16x32xf32>
    %58 = tpu.matmul %55, %57, %cst_23 {dimension_numbers = #tpu.dot_dimension_numbers<[1], [0], [0], [1], [0, 0, 1, 1], [], []>} : vector<16x8xf32>, vector<8x32xf32>, vector<16x32xf32> -> vector<16x32xf32>
    %59 = arith.addf %37, %58 : vector<16x32xf32>
    %60 = vector.extract_strided_slice %28 {offsets = [0, 0, 8], sizes = [2, 8, 8], strides = [1, 1, 1]} : vector<2x8x96xf32> to vector<2x8x8xf32>
    %61 = vector.extract_strided_slice %28 {offsets = [0, 0, 40], sizes = [2, 8, 8], strides = [1, 1, 1]} : vector<2x8x96xf32> to vector<2x8x8xf32>
    %62 = vector.extract_strided_slice %28 {offsets = [0, 0, 72], sizes = [2, 8, 8], strides = [1, 1, 1]} : vector<2x8x96xf32> to vector<2x8x8xf32>
    "tpu.trace_start"() <{level = 10 : i32, message = "bqd,bkd->bqk"}> : () -> ()
    %cst_24 = arith.constant dense<0.000000e+00> : vector<2x8x8xf32>
    %63 = tpu.matmul %60, %61, %cst_24 {dimension_numbers = #tpu.dot_dimension_numbers<[2], [2], [1], [1], [0, 0, 0, 1, 1, 1], [0], [0]>} : vector<2x8x8xf32>, vector<2x8x8xf32>, vector<2x8x8xf32> -> vector<2x8x8xf32>
    "tpu.trace_stop"() : () -> ()
    %64 = vector.shape_cast %36 : vector<8x8xf32> to vector<1x8x8xf32>
    %65 = vector.broadcast %64 : vector<1x8x8xf32> to vector<2x8x8xf32>
    %66 = arith.addf %63, %65 : vector<2x8x8xf32>
    %cst_25 = arith.constant dense<0xFF800000> : vector<2x8xf32>
    %67 = vector.multi_reduction <maximumf>, %66, %cst_25 [2] : vector<2x8x8xf32> to vector<2x8xf32>
    %68 = vector.shape_cast %67 : vector<2x8xf32> to vector<2x8x1xf32>
    %69 = vector.broadcast %68 : vector<2x8x1xf32> to vector<2x8x8xf32>
    %70 = arith.subf %66, %69 : vector<2x8x8xf32>
    %71 = math.exp %70 : vector<2x8x8xf32>
    %cst_26 = arith.constant dense<0.000000e+00> : vector<2x8xf32>
    %72 = vector.multi_reduction <add>, %71, %cst_26 [2] : vector<2x8x8xf32> to vector<2x8xf32>
    %73 = vector.shape_cast %72 : vector<2x8xf32> to vector<2x8x1xf32>
    "tpu.trace_start"() <{level = 10 : i32, message = "bqk,bkd->bqd"}> : () -> ()
    %cst_27 = arith.constant dense<0.000000e+00> : vector<2x8x8xf32>
    %74 = tpu.matmul %71, %62, %cst_27 {dimension_numbers = #tpu.dot_dimension_numbers<[2], [1], [1], [2], [0, 0, 0, 1, 1, 2], [0], [0]>} : vector<2x8x8xf32>, vector<2x8x8xf32>, vector<2x8x8xf32> -> vector<2x8x8xf32>
    "tpu.trace_stop"() : () -> ()
    %75 = vector.broadcast %73 : vector<2x8x1xf32> to vector<2x8x8xf32>
    %76 = arith.divf %74, %75 : vector<2x8x8xf32>
    %77 = vector.shape_cast %76 : vector<2x8x8xf32> to vector<16x8xf32>
    %c1 = arith.constant 1 : index
    %c0_28 = arith.constant 0 : index
    %c0_29 = arith.constant 0 : index
    %78 = vector.load %arg5[%c1, %c0_28, %c0_29] : memref<4x8x32xf32, #tpu.memory_space<vmem>>, vector<1x8x32xf32>
    %79 = vector.shape_cast %78 : vector<1x8x32xf32> to vector<8x32xf32>
    %cst_30 = arith.constant dense<0.000000e+00> : vector<16x32xf32>
    %80 = tpu.matmul %77, %79, %cst_30 {dimension_numbers = #tpu.dot_dimension_numbers<[1], [0], [0], [1], [0, 0, 1, 1], [], []>} : vector<16x8xf32>, vector<8x32xf32>, vector<16x32xf32> -> vector<16x32xf32>
    %81 = arith.addf %59, %80 : vector<16x32xf32>
    %82 = vector.extract_strided_slice %28 {offsets = [0, 0, 16], sizes = [2, 8, 8], strides = [1, 1, 1]} : vector<2x8x96xf32> to vector<2x8x8xf32>
    %83 = vector.extract_strided_slice %28 {offsets = [0, 0, 48], sizes = [2, 8, 8], strides = [1, 1, 1]} : vector<2x8x96xf32> to vector<2x8x8xf32>
    %84 = vector.extract_strided_slice %28 {offsets = [0, 0, 80], sizes = [2, 8, 8], strides = [1, 1, 1]} : vector<2x8x96xf32> to vector<2x8x8xf32>
    "tpu.trace_start"() <{level = 10 : i32, message = "bqd,bkd->bqk"}> : () -> ()
    %cst_31 = arith.constant dense<0.000000e+00> : vector<2x8x8xf32>
    %85 = tpu.matmul %82, %83, %cst_31 {dimension_numbers = #tpu.dot_dimension_numbers<[2], [2], [1], [1], [0, 0, 0, 1, 1, 1], [0], [0]>} : vector<2x8x8xf32>, vector<2x8x8xf32>, vector<2x8x8xf32> -> vector<2x8x8xf32>
    "tpu.trace_stop"() : () -> ()
    %86 = vector.shape_cast %36 : vector<8x8xf32> to vector<1x8x8xf32>
    %87 = vector.broadcast %86 : vector<1x8x8xf32> to vector<2x8x8xf32>
    %88 = arith.addf %85, %87 : vector<2x8x8xf32>
    %cst_32 = arith.constant dense<0xFF800000> : vector<2x8xf32>
    %89 = vector.multi_reduction <maximumf>, %88, %cst_32 [2] : vector<2x8x8xf32> to vector<2x8xf32>
    %90 = vector.shape_cast %89 : vector<2x8xf32> to vector<2x8x1xf32>
    %91 = vector.broadcast %90 : vector<2x8x1xf32> to vector<2x8x8xf32>
    %92 = arith.subf %88, %91 : vector<2x8x8xf32>
    %93 = math.exp %92 : vector<2x8x8xf32>
    %cst_33 = arith.constant dense<0.000000e+00> : vector<2x8xf32>
    %94 = vector.multi_reduction <add>, %93, %cst_33 [2] : vector<2x8x8xf32> to vector<2x8xf32>
    %95 = vector.shape_cast %94 : vector<2x8xf32> to vector<2x8x1xf32>
    "tpu.trace_start"() <{level = 10 : i32, message = "bqk,bkd->bqd"}> : () -> ()
    %cst_34 = arith.constant dense<0.000000e+00> : vector<2x8x8xf32>
    %96 = tpu.matmul %93, %84, %cst_34 {dimension_numbers = #tpu.dot_dimension_numbers<[2], [1], [1], [2], [0, 0, 0, 1, 1, 2], [0], [0]>} : vector<2x8x8xf32>, vector<2x8x8xf32>, vector<2x8x8xf32> -> vector<2x8x8xf32>
    "tpu.trace_stop"() : () -> ()
    %97 = vector.broadcast %95 : vector<2x8x1xf32> to vector<2x8x8xf32>
    %98 = arith.divf %96, %97 : vector<2x8x8xf32>
    %99 = vector.shape_cast %98 : vector<2x8x8xf32> to vector<16x8xf32>
    %c2 = arith.constant 2 : index
    %c0_35 = arith.constant 0 : index
    %c0_36 = arith.constant 0 : index
    %100 = vector.load %arg5[%c2, %c0_35, %c0_36] : memref<4x8x32xf32, #tpu.memory_space<vmem>>, vector<1x8x32xf32>
    %101 = vector.shape_cast %100 : vector<1x8x32xf32> to vector<8x32xf32>
    %cst_37 = arith.constant dense<0.000000e+00> : vector<16x32xf32>
    %102 = tpu.matmul %99, %101, %cst_37 {dimension_numbers = #tpu.dot_dimension_numbers<[1], [0], [0], [1], [0, 0, 1, 1], [], []>} : vector<16x8xf32>, vector<8x32xf32>, vector<16x32xf32> -> vector<16x32xf32>
    %103 = arith.addf %81, %102 : vector<16x32xf32>
    %104 = vector.extract_strided_slice %28 {offsets = [0, 0, 24], sizes = [2, 8, 8], strides = [1, 1, 1]} : vector<2x8x96xf32> to vector<2x8x8xf32>
    %105 = vector.extract_strided_slice %28 {offsets = [0, 0, 56], sizes = [2, 8, 8], strides = [1, 1, 1]} : vector<2x8x96xf32> to vector<2x8x8xf32>
    %106 = vector.extract_strided_slice %28 {offsets = [0, 0, 88], sizes = [2, 8, 8], strides = [1, 1, 1]} : vector<2x8x96xf32> to vector<2x8x8xf32>
    "tpu.trace_start"() <{level = 10 : i32, message = "bqd,bkd->bqk"}> : () -> ()
    %cst_38 = arith.constant dense<0.000000e+00> : vector<2x8x8xf32>
    %107 = tpu.matmul %104, %105, %cst_38 {dimension_numbers = #tpu.dot_dimension_numbers<[2], [2], [1], [1], [0, 0, 0, 1, 1, 1], [0], [0]>} : vector<2x8x8xf32>, vector<2x8x8xf32>, vector<2x8x8xf32> -> vector<2x8x8xf32>
    "tpu.trace_stop"() : () -> ()
    %108 = vector.shape_cast %36 : vector<8x8xf32> to vector<1x8x8xf32>
    %109 = vector.broadcast %108 : vector<1x8x8xf32> to vector<2x8x8xf32>
    %110 = arith.addf %107, %109 : vector<2x8x8xf32>
    %cst_39 = arith.constant dense<0xFF800000> : vector<2x8xf32>
    %111 = vector.multi_reduction <maximumf>, %110, %cst_39 [2] : vector<2x8x8xf32> to vector<2x8xf32>
    %112 = vector.shape_cast %111 : vector<2x8xf32> to vector<2x8x1xf32>
    %113 = vector.broadcast %112 : vector<2x8x1xf32> to vector<2x8x8xf32>
    %114 = arith.subf %110, %113 : vector<2x8x8xf32>
    %115 = math.exp %114 : vector<2x8x8xf32>
    %cst_40 = arith.constant dense<0.000000e+00> : vector<2x8xf32>
    %116 = vector.multi_reduction <add>, %115, %cst_40 [2] : vector<2x8x8xf32> to vector<2x8xf32>
    %117 = vector.shape_cast %116 : vector<2x8xf32> to vector<2x8x1xf32>
    "tpu.trace_start"() <{level = 10 : i32, message = "bqk,bkd->bqd"}> : () -> ()
    %cst_41 = arith.constant dense<0.000000e+00> : vector<2x8x8xf32>
    %118 = tpu.matmul %115, %106, %cst_41 {dimension_numbers = #tpu.dot_dimension_numbers<[2], [1], [1], [2], [0, 0, 0, 1, 1, 2], [0], [0]>} : vector<2x8x8xf32>, vector<2x8x8xf32>, vector<2x8x8xf32> -> vector<2x8x8xf32>
    "tpu.trace_stop"() : () -> ()
    %119 = vector.broadcast %117 : vector<2x8x1xf32> to vector<2x8x8xf32>
    %120 = arith.divf %118, %119 : vector<2x8x8xf32>
    %121 = vector.shape_cast %120 : vector<2x8x8xf32> to vector<16x8xf32>
    %c3 = arith.constant 3 : index
    %c0_42 = arith.constant 0 : index
    %c0_43 = arith.constant 0 : index
    %122 = vector.load %arg5[%c3, %c0_42, %c0_43] : memref<4x8x32xf32, #tpu.memory_space<vmem>>, vector<1x8x32xf32>
    %123 = vector.shape_cast %122 : vector<1x8x32xf32> to vector<8x32xf32>
    %cst_44 = arith.constant dense<0.000000e+00> : vector<16x32xf32>
    %124 = tpu.matmul %121, %123, %cst_44 {dimension_numbers = #tpu.dot_dimension_numbers<[1], [0], [0], [1], [0, 0, 1, 1], [], []>} : vector<16x8xf32>, vector<8x32xf32>, vector<16x32xf32> -> vector<16x32xf32>
    %125 = arith.addf %103, %124 : vector<16x32xf32>
    %126 = arith.addf %1, %125 : vector<16x32xf32>
    %c0_45 = arith.constant 0 : index
    %c0_46 = arith.constant 0 : index
    %127 = vector.load %arg6[%c0_45, %c0_46] : memref<1x32xf32, #tpu.memory_space<vmem>>, vector<1x32xf32>
    %128 = vector.broadcast %127 : vector<1x32xf32> to vector<16x32xf32>
    %129 = arith.addf %126, %128 : vector<16x32xf32>
    %c0_47 = arith.constant 0 : index
    %c0_48 = arith.constant 0 : index
    %130 = vector.load %arg7[%c0_47, %c0_48] : memref<1x32xf32, #tpu.memory_space<vmem>>, vector<1x32xf32>
    %c0_49 = arith.constant 0 : index
    %c0_50 = arith.constant 0 : index
    %131 = vector.load %arg8[%c0_49, %c0_50] : memref<1x32xf32, #tpu.memory_space<vmem>>, vector<1x32xf32>
    %cst_51 = arith.constant dense<0.000000e+00> : vector<16xf32>
    %132 = vector.multi_reduction <add>, %129, %cst_51 [1] : vector<16x32xf32> to vector<16xf32>
    %133 = vector.shape_cast %132 : vector<16xf32> to vector<16x1xf32>
    %cst_52 = arith.constant 3.200000e+01 : f32
    %134 = vector.broadcast %cst_52 : f32 to vector<16x1xf32>
    %135 = arith.divf %133, %134 : vector<16x1xf32>
    %136 = vector.broadcast %135 : vector<16x1xf32> to vector<16x32xf32>
    %137 = arith.subf %129, %136 : vector<16x32xf32>
    %138 = arith.mulf %137, %137 : vector<16x32xf32>
    %cst_53 = arith.constant dense<0.000000e+00> : vector<16xf32>
    %139 = vector.multi_reduction <add>, %138, %cst_53 [1] : vector<16x32xf32> to vector<16xf32>
    %140 = vector.shape_cast %139 : vector<16xf32> to vector<16x1xf32>
    %cst_54 = arith.constant 3.200000e+01 : f32
    %141 = vector.broadcast %cst_54 : f32 to vector<16x1xf32>
    %142 = arith.divf %140, %141 : vector<16x1xf32>
    %143 = vector.broadcast %135 : vector<16x1xf32> to vector<16x32xf32>
    %144 = arith.subf %129, %143 : vector<16x32xf32>
    %cst_55 = arith.constant 9.99999974E-6 : f32
    %145 = vector.broadcast %cst_55 : f32 to vector<16x1xf32>
    %146 = arith.addf %142, %145 : vector<16x1xf32>
    %147 = math.rsqrt %146 : vector<16x1xf32>
    %148 = vector.broadcast %147 : vector<16x1xf32> to vector<16x32xf32>
    %149 = arith.mulf %144, %148 : vector<16x32xf32>
    %150 = vector.broadcast %130 : vector<1x32xf32> to vector<16x32xf32>
    %151 = arith.mulf %149, %150 : vector<16x32xf32>
    %152 = vector.broadcast %131 : vector<1x32xf32> to vector<16x32xf32>
    %153 = arith.addf %151, %152 : vector<16x32xf32>
    %c0_56 = arith.constant 0 : index
    %c0_57 = arith.constant 0 : index
    %154 = vector.load %arg9[%c0_56, %c0_57] : memref<32x128xf32, #tpu.memory_space<vmem>>, vector<32x128xf32>
    %cst_58 = arith.constant dense<0.000000e+00> : vector<16x128xf32>
    %155 = tpu.matmul %153, %154, %cst_58 {dimension_numbers = #tpu.dot_dimension_numbers<[1], [0], [0], [1], [0, 0, 1, 1], [], []>} : vector<16x32xf32>, vector<32x128xf32>, vector<16x128xf32> -> vector<16x128xf32>
    %c0_59 = arith.constant 0 : index
    %c0_60 = arith.constant 0 : index
    %156 = vector.load %arg10[%c0_59, %c0_60] : memref<1x128xf32, #tpu.memory_space<vmem>>, vector<1x128xf32>
    %157 = vector.broadcast %156 : vector<1x128xf32> to vector<16x128xf32>
    %158 = arith.addf %155, %157 : vector<16x128xf32>
    %cst_61 = arith.constant 0.000000e+00 : f32
    %159 = vector.broadcast %cst_61 : f32 to vector<16x128xf32>
    %160 = arith.maximumf %158, %159 : vector<16x128xf32>
    %c0_62 = arith.constant 0 : index
    %c0_63 = arith.constant 0 : index
    %161 = vector.load %arg11[%c0_62, %c0_63] : memref<128x32xf32, #tpu.memory_space<vmem>>, vector<128x32xf32>
    %cst_64 = arith.constant dense<0.000000e+00> : vector<16x32xf32>
    %162 = tpu.matmul %160, %161, %cst_64 {dimension_numbers = #tpu.dot_dimension_numbers<[1], [0], [0], [1], [0, 0, 1, 1], [], []>} : vector<16x128xf32>, vector<128x32xf32>, vector<16x32xf32> -> vector<16x32xf32>
    %c0_65 = arith.constant 0 : index
    %c0_66 = arith.constant 0 : index
    %163 = vector.load %arg12[%c0_65, %c0_66] : memref<1x32xf32, #tpu.memory_space<vmem>>, vector<1x32xf32>
    %164 = vector.broadcast %163 : vector<1x32xf32> to vector<16x32xf32>
    %165 = arith.addf %162, %164 : vector<16x32xf32>
    %166 = arith.addf %129, %165 : vector<16x32xf32>
    %167 = vector.shape_cast %166 : vector<16x32xf32> to vector<2x8x32xf32>
    %c0_67 = arith.constant 0 : index
    %c0_68 = arith.constant 0 : index
    %c0_69 = arith.constant 0 : index
    %168 = vector.load %arg13[%c0_67, %c0_68, %c0_69] : memref<2x8x32xf32, #tpu.memory_space<vmem>>, vector<2x8x32xf32>
    tpu.vector_store %arg13[%c0_67, %c0_68, %c0_69], %167 {strides = array<i32>} : memref<2x8x32xf32, #tpu.memory_space<vmem>>, vector<2x8x32xf32>,
    return
  }
  func.func @transform_0(%arg0: i32) -> (i32, i32, i32) {
    %c0_i32 = arith.constant 0 : i32
    %c0_i32_0 = arith.constant 0 : i32
    %c0_i32_1 = arith.constant 0 : i32
    return %arg0, %c0_i32, %c0_i32_0 : i32, i32, i32
  }
  func.func @transform_1(%arg0: i32) -> (i32, i32) {
    %c0_i32 = arith.constant 0 : i32
    %c0_i32_0 = arith.constant 0 : i32
    %c0_i32_1 = arith.constant 0 : i32
    return %c0_i32, %c0_i32_0 : i32, i32
  }
  func.func @transform_2(%arg0: i32) -> (i32, i32) {
    %c0_i32 = arith.constant 0 : i32
    %c0_i32_0 = arith.constant 0 : i32
    %c0_i32_1 = arith.constant 0 : i32
    return %c0_i32, %c0_i32_0 : i32, i32
  }
  func.func @transform_3(%arg0: i32) -> (i32, i32) {
    %c0_i32 = arith.constant 0 : i32
    %c0_i32_0 = arith.constant 0 : i32
    %c0_i32_1 = arith.constant 0 : i32
    return %c0_i32, %c0_i32_0 : i32, i32
  }
  func.func @transform_4(%arg0: i32) -> (i32, i32, i32) {
    %c0_i32 = arith.constant 0 : i32
    %c0_i32_0 = arith.constant 0 : i32
    %c0_i32_1 = arith.constant 0 : i32
    %c0_i32_2 = arith.constant 0 : i32
    return %c0_i32, %c0_i32_0, %c0_i32_1 : i32, i32, i32
  }
  func.func @transform_5(%arg0: i32) -> (i32, i32) {
    %c0_i32 = arith.constant 0 : i32
    %c0_i32_0 = arith.constant 0 : i32
    %c0_i32_1 = arith.constant 0 : i32
    return %c0_i32, %c0_i32_0 : i32, i32
  }
  func.func @transform_6(%arg0: i32) -> (i32, i32) {
    %c0_i32 = arith.constant 0 : i32
    %c0_i32_0 = arith.constant 0 : i32
    %c0_i32_1 = arith.constant 0 : i32
    return %c0_i32, %c0_i32_0 : i32, i32
  }
  func.func @transform_7(%arg0: i32) -> (i32, i32) {
    %c0_i32 = arith.constant 0 : i32
    %c0_i32_0 = arith.constant 0 : i32
    %c0_i32_1 = arith.constant 0 : i32
    return %c0_i32, %c0_i32_0 : i32, i32
  }
  func.func @transform_8(%arg0: i32) -> (i32, i32) {
    %c0_i32 = arith.constant 0 : i32
    %c0_i32_0 = arith.constant 0 : i32
    %c0_i32_1 = arith.constant 0 : i32
    return %c0_i32, %c0_i32_0 : i32, i32
  }
  func.func @transform_9(%arg0: i32) -> (i32, i32) {
    %c0_i32 = arith.constant 0 : i32
    %c0_i32_0 = arith.constant 0 : i32
    %c0_i32_1 = arith.constant 0 : i32
    return %c0_i32, %c0_i32_0 : i32, i32
  }
  func.func @transform_10(%arg0: i32) -> (i32, i32) {
    %c0_i32 = arith.constant 0 : i32
    %c0_i32_0 = arith.constant 0 : i32
    %c0_i32_1 = arith.constant 0 : i32
    return %c0_i32, %c0_i32_0 : i32, i32
  }
  func.func @transform_11(%arg0: i32) -> (i32, i32) {
    %c0_i32 = arith.constant 0 : i32
    %c0_i32_0 = arith.constant 0 : i32
    %c0_i32_1 = arith.constant 0 : i32
    return %c0_i32, %c0_i32_0 : i32, i32
  }
  func.func @transform_12(%arg0: i32) -> (i32, i32, i32) {
    %c0_i32 = arith.constant 0 : i32
    %c0_i32_0 = arith.constant 0 : i32
    %c0_i32_1 = arith.constant 0 : i32
    return %arg0, %c0_i32, %c0_i32_0 : i32, i32, i32
  }
}

</mosaic_0001>

<bundles_post_ra>
// kernel: tpu_custom_call.1
= control target key start
LH: loop header
LB: loop body
LE: loop exit
PB: predicated region body
PF: predicated region fallthrough
CT: control target
= control target key end

     0   :  { %vm46_vm0 = vcmask 261120   ;;  %s2909_s0 = inlined_call_operand.vmem [shape: f32[2,8,32], index: 0, kind: input, shape index: {}]   ;;  %s2910_s1 = inlined_call_operand.vmem [shape: f32[1,32], index: 1, kind: input, shape index: {}]   ;;  %s2911_s2 = inlined_call_operand.vmem [shape: f32[1,32], index: 2, kind: input, shape index: {}]   ;;  %s2912_s3 = inlined_call_operand.vmem [shape: f32[32,96], index: 3, kind: input, shape index: {}]   ;;  %s2913_s4 = inlined_call_operand.vmem [shape: f32[4,8,32], index: 4, kind: input, shape index: {}]   ;;  %s2914_s5 = inlined_call_operand.vmem [shape: f32[1,32], index: 5, kind: input, shape index: {}]   ;;  %s2915_s6 = inlined_call_operand.vmem [shape: f32[1,32], index: 6, kind: input, shape index: {}]   ;;  %s2916_s7 = inlined_call_operand.vmem [shape: f32[1,32], index: 7, kind: input, shape index: {}]   ;;  %s2917_s8 = inlined_call_operand.vmem [shape: f32[32,128], index: 8, kind: input, shape index: {}]   ;;  %s2918_s9 = inlined_call_operand.vmem [shape: f32[1,128], index: 9, kind: input, shape index: {}]   ;;  %s2919_s10 = inlined_call_operand.vmem [shape: f32[128,32], index: 10, kind: input, shape index: {}]   ;;  %s2920_s11 = inlined_call_operand.vmem [shape: f32[1,32], index: 11, kind: input, shape index: {}]   ;;  %s2921_s12 = inlined_call_operand.hbm [shape: f32[2,8,32], index: 12, kind: output, shape index: {}]  }
   0x1   :  { %v2599_v0 = vld [vmem:[%s2909_s0] sm:$0xff]  ;;  %v2604_v1 = vld [vmem:[%s2909_s0 + $0x8] sm:$0xff] }
   0x2   :  { %17 = vsyncpa [#allocation3], 0  ;;  %v47_v2 = vsel %vm46_vm0, %v2599_v0, 0.0  ;;  %v50_v3 = vsel %vm46_vm0, %v2604_v1, 0.0  ;;  %v90_v14 = vld [vmem:[%s2912_s3] sm:$0xff]  ;;  %v91_v15 = vld [vmem:[%s2912_s3 + $0x8] sm:$0xff]  ;;  %v175_v41 = vlaneseq }
   0x3   :  { %48 = vadd.xlane.f32.xlu0 %v47_v2  ;;  %v92_v16 = vld [vmem:[%s2912_s3 + $0x10] sm:$0xff]  ;;  %v2379_v17 = vpack.c.bf16 %v91_v15, %v90_v14  ;;  %v93_v18 = vld [vmem:[%s2912_s3 + $0x18] sm:$0xff]  ;;  %v2102_v27 = vld [vmem:[%s2910_s1] ss:$0 sm:$0xff]  ;;  %v2514_v36 = vmov 0.0   ;;  %vm2515_vm1 = vmmov 0  }
   0x4   :  { %v2383_v19 = vpack.c.bf16 %v93_v18, %v92_v16  ;;  %v2103_v29 = vld [vmem:[%s2911_s2] ss:$0 sm:$0xff]  ;;  %2263 = vmatprep.subr.mxu0 %v2514_v36  ;;  %2265 = vmatprep.mubr.msk.f32.mxu0 %vm2515_vm1, %v2514_v36  ;;  %s2516_s1 = smov 96   ;;  %vm184_vm2 = vcmask 64512   ;;  %v176_v42 = vshrl.u32 %v175_v41, 7  ;;  %v178_v43 = vand.u32 127, %v175_v41 }
   0x5   :  { %2380 = vmatprep.subr.bf16.mxu1 %v2379_v17  ;;  %v2517_v44 = vmov -1e+30   ;;  %s2518_s2 = smov 64   ;;  %s2519_s17 = smov 88  }
   0x6   :  { %2382 = vmatpush3.bf16.msra.mxu1 %v2379_v17  ;;  %vm179_vm3 = vcmp.le.s32.totalorder %v178_v43, %v176_v42  ;;  %s2520_s18 = smov 120   ;;  %s2521_s19 = smov 56  }
   0x7   :  { %51 = vadd.xlane.f32.xlu0 %v50_v3  ;;  %2384 = vmatprep.subr.bf16.mxu1 %v2383_v19  ;;  %v2658_v45 = vsel %vm179_vm3, 0.0, %v2517_v44  ;;  %s2522_s20 = smov 80   ;;  %s2523_s21 = smov 112  }
   0x8   :  { %s2524_s22 = smov 48   ;;  %s2525_s26 = smov 72  }
   0x9   :  { %s2526_s27 = smov 104   ;;  %s2527_s30 = smov 40  }
   0xa   :  { %2386 = vmatpush3.bf16.msra.mxu1 %v2383_v19 }
   0xb   :  { %2233 = vmatprep.subr.mxu1 %v2514_v36 }
  0x90   :  { %v49_v4 = vpop.xlane.xlu0 %48 }
  0x91   :  { %v54_v5 = vmul.f32 0.03125, %v49_v4 }
  0x93   :  { %v56_v6 = vsub.f32 %v2599_v0, %v54_v5 }
  0x94   :  { %v52_v7 = vpop.xlane.xlu0 %51 }
  0x95   :  { %v55_v8 = vmul.f32 0.03125, %v52_v7  ;;  %v58_v9 = vmul.f32 %v56_v6, %v56_v6 }
  0x97   :  { %v57_v10 = vsub.f32 %v2604_v1, %v55_v8  ;;  %v60_v11 = vsel %vm46_vm0, %v58_v9, 0.0 }
  0x98   :  { %61 = vadd.xlane.f32.xlu1 %v60_v11 }
  0x99   :  { %v59_v12 = vmul.f32 %v57_v10, %v57_v10 }
  0x9b   :  { %v63_v13 = vsel %vm46_vm0, %v59_v12, 0.0 }
  0x9c   :  { %64 = vadd.xlane.f32.xlu1 %v63_v13 }
 0x125   :  { %v62_v20 = vpop.xlane.xlu1 %61 }
 0x126   :  { %v66_v21 = vmul.f32 0.03125, %v62_v20 }
 0x128   :  { %v68_v22 = vadd.f32 1e-05, %v66_v21 }
 0x129   :  { %v65_v23 = vpop.xlane.xlu1 %64 }
 0x12a   :  { %2450 = vrsqrt.f32 %v68_v22  ;;  %v67_v24 = vmul.f32 0.03125, %v65_v23 }
 0x12c   :  { %v69_v25 = vadd.f32 1e-05, %v67_v24 }
 0x12e   :  { %2452 = vrsqrt.f32 %v69_v25 }
 0x134   :  { %v2451_v26 = vpop.eup %2450 }
 0x135   :  { %v72_v28 = vmul.f32 %v2451_v26, %v56_v6 }
 0x137   :  { %v80_v30 = vmul.f32 %v2102_v27, %v72_v28 }
 0x138   :  { %v2453_v31 = vpop.eup %2452 }
 0x139   :  { %v73_v32 = vmul.f32 %v2453_v31, %v57_v10  ;;  %v88_v33 = vadd.f32 %v2103_v29, %v80_v30 }
 0x13b   :  { %v81_v34 = vmul.f32 %v2102_v27, %v73_v32  ;;  %2230 = vmatprep.mubr.msk.f32.mxu1 %vm46_vm0, %v88_v33 }
 0x13d   :  { %v89_v35 = vadd.f32 %v2103_v29, %v81_v34 }
 0x13f   :  { %2231 = vmatmul.mubr.msk.f32.vlgmr.msra.gmra.mrb[0].mxu1 %vm46_vm0, %v89_v35 }
 0x140   :  { %2235 = vmatprep.mubr.msk.f32.mxu1 %vm2515_vm1, %v2514_v36 }
 0x212   :  { %v2640_v37 = vpop.f32.mrb[0].mxu1 }
 0x213   :  { %260 = vrot.lane.b32.xlu1 %v2640_v37, %s2516_s1  ;;  %v2643_v38 = vpop.f32.mrb[1].mxu1 }
 0x214   :  { %182 = vrot.lane.b32.xlu0 %v2643_v38, %s2516_s1 }
 0x285   :  { %v261_v40 = vpop.permute.xlu1 %260 }
 0x286   :  { %v183_v39 = vpop.permute.xlu0 %182 }
 0x287   :  { %2234 = vmatpush3.xpose.msk.msra.mxu1 %vm184_vm2, %v183_v39  ;;  %v2118_v39 = vld [vmem:[%s2913_s4 + $0x8] sm:$0xff] }
 0x288   :  { %2238 = vmatprep.subr.mxu1 %v2514_v36 }
 0x28a   :  { %2236 = vmatmul.mubr.msk.f32.vlgmr.msra.gmra.mrb[2].mxu1 %vm184_vm2, %v2643_v38 }
 0x28b   :  { %2239 = vmatpush3.xpose.msk.msra.mxu1 %vm184_vm2, %v261_v40  ;;  %2240 = vmatprep.mubr.msk.f32.mxu1 %vm2515_vm1, %v2514_v36  ;;  %v510_v40 = vld [vmem:[%s2913_s4] sm:$0xff] }
 0x28c   :  { %2243 = vmatprep.subr.mxu1 %v2514_v36 }
 0x28e   :  { %2241 = vmatmul.mubr.msk.f32.vlgmr.msra.gmra.mrb[4].mxu1 %vm184_vm2, %v2640_v37 }
 0x28f   :  { %2245 = vmatprep.mubr.msk.f32.mxu1 %vm2515_vm1, %v2514_v36 }
 0x35d   :  { %v255_v46 = vpop.f32.mrb[2].mxu1 }
 0x35e   :  { %v256_v47 = vadd.f32 %v255_v46, %v2658_v45  ;;  %v2237_v48 = vpop.f32.mrb[3].mxu1 }
 0x360   :  { %v336_v49 = vsel %vm184_vm2, %v256_v47, -inf }
 0x361   :  { %337 = vmax.xlane.f32.xlu1 %v336_v49  ;;  %v332_v50 = vpop.f32.mrb[4].mxu1 }
 0x362   :  { %v333_v51 = vadd.f32 %v332_v50, %v2658_v45  ;;  %v2242_v52 = vpop.f32.mrb[5].mxu1 }
 0x364   :  { %v339_v53 = vsel %vm184_vm2, %v333_v51, -inf }
 0x365   :  { %340 = vmax.xlane.f32.xlu0 %v339_v53 }
 0x372   :  { %430 = vrot.lane.b32.xlu1 %v2640_v37, %s2518_s2 }
 0x376   :  { %513 = vrot.lane.b32.xlu1 %v2643_v38, %s2519_s17 }
 0x37a   :  { %511 = vrot.lane.b32.xlu1 %v2643_v38, %s2520_s18 }
 0x37b   :  { %354 = vrot.lane.b32.xlu0 %v2643_v38, %s2518_s2 }
 0x37e   :  { %589 = vrot.lane.b32.xlu1 %v2640_v37, %s2520_s18 }
 0x37f   :  { %591 = vrot.lane.b32.xlu0 %v2640_v37, %s2519_s17 }
 0x382   :  { %761 = vrot.lane.b32.xlu1 %v2640_v37, %s2521_s19 }
 0x386   :  { %1007 = vrot.lane.b32.xlu1 %v2643_v38, %s2522_s20 }
 0x38a   :  { %1005 = vrot.lane.b32.xlu1 %v2643_v38, %s2523_s21 }
 0x38e   :  { %1085 = vrot.lane.b32.xlu1 %v2640_v37, %s2522_s20 }
 0x392   :  { %1083 = vrot.lane.b32.xlu1 %v2640_v37, %s2523_s21 }
 0x3ee   :  { %v338_v54 = vpop.xlane.xlu1 %337 }
 0x3ef   :  { %v342_v55 = vsub.f32 %v256_v47, %v338_v54 }
 0x3f1   :  { %v344_v56 = vmul.f32 1.442695, %v342_v55 }
 0x3f2   :  { %v341_v57 = vpop.xlane.xlu0 %340  ;;  %v431_v59 = vpop.permute.xlu1 %430 }
 0x3f3   :  { %2454 = vpow2.f32 %v344_v56  ;;  %v343_v58 = vsub.f32 %v333_v51, %v341_v57 }
 0x3f5   :  { %v346_v60 = vmul.f32 1.442695, %v343_v58 }
 0x3f6   :  { %v355_v61 = vpop.permute.xlu0 %354  ;;  %v514_v62 = vpop.permute.xlu1 %513 }
 0x3f7   :  { %2456 = vpow2.f32 %v346_v60  ;;  %2244 = vmatpush3.msra.mxu1 %v355_v61 }
 0x3f8   :  { %2248 = vmatprep.subr.mxu1 %v2514_v36 }
 0x3fa   :  { %v512_v3 = vpop.permute.xlu1 %511  ;;  %v592_v5 = vpop.permute.xlu0 %591 }
 0x3fd   :  { %v2455_v63 = vpop.eup %2454 }
 0x3fe   :  { %2246 = vmatmul.mubr.msk.f32.vlgmr.msra.gmra.mrb[6].mxu1 %vm184_vm2, %v2455_v63  ;;  %v590_v4 = vpop.permute.xlu1 %589  ;;  %v348_v18 = vsel %vm184_vm2, %v2455_v63, 0.0 }
 0x3ff   :  { %2249 = vmatpush3.msra.mxu1 %v431_v59  ;;  %2250 = vmatprep.mubr.msk.f32.mxu1 %vm2515_vm1, %v2514_v36 }
 0x400   :  { %2253 = vmatprep.subr.mxu1 %v2514_v36 }
 0x401   :  { %v2457_v2 = vpop.eup %2456 }
 0x402   :  { %2251 = vmatmul.mubr.msk.f32.vlgmr.msra.gmra.mrb[8].mxu1 %vm184_vm2, %v2457_v2  ;;  %v762_v6 = vpop.permute.xlu1 %761  ;;  %v351_v20 = vsel %vm184_vm2, %v2457_v2, 0.0 }
 0x403   :  { %2255 = vmatprep.mubr.msk.f32.mxu1 %vm2515_vm1, %v2514_v36 }
 0x406   :  { %2254 = vmatpush3.xpose.msk.msra.mxu1 %vm184_vm2, %v514_v62  ;;  %v1008_v21 = vpop.permute.xlu1 %1007 }
 0x407   :  { %2258 = vmatprep.subr.mxu1 %v2514_v36 }
 0x409   :  { %2256 = vmatmul.mubr.msk.f32.vlgmr.msra.gmra.mrb[10].mxu1 %vm184_vm2, %v512_v3 }
 0x40a   :  { %2259 = vmatpush3.xpose.msk.msra.mxu1 %vm184_vm2, %v592_v5  ;;  %2260 = vmatprep.mubr.msk.f32.mxu1 %vm2515_vm1, %v2514_v36  ;;  %v1006_v22 = vpop.permute.xlu1 %1005 }
 0x40b   :  { %2268 = vmatprep.subr.mxu1 %v2514_v36 }
 0x40d   :  { %2261 = vmatmul.mubr.msk.f32.vlgmr.msra.gmra.mrb[12].mxu1 %vm184_vm2, %v590_v4 }
 0x40e   :  { %2269 = vmatpush3.msra.mxu1 %v762_v6  ;;  %2270 = vmatprep.mubr.msk.f32.mxu1 %vm2515_vm1, %v2514_v36  ;;  %v1086_v23 = vpop.permute.xlu1 %1085 }
 0x40f   :  { %2283 = vmatprep.subr.mxu1 %v2514_v36 }
 0x412   :  { %v1084_v24 = vpop.permute.xlu1 %1083 }
 0x4d1   :  { %v2695_v7 = vpop.f32.mrb[6].mxu1 }
 0x4d2   :  { %v2247_v8 = vpop.f32.mrb[7].mxu1 }
 0x4d5   :  { %v2697_v9 = vpop.f32.mrb[8].mxu1 }
 0x4d6   :  { %v2252_v10 = vpop.f32.mrb[9].mxu1 }
 0x4dc   :  { %v585_v11 = vpop.f32.mrb[10].mxu1 }
 0x4dd   :  { %v586_v12 = vadd.f32 %v585_v11, %v2658_v45  ;;  %v2257_v13 = vpop.f32.mrb[11].mxu1 }
 0x4df   :  { %v667_v14 = vsel %vm184_vm2, %v586_v12, -inf }
 0x4e0   :  { %668 = vmax.xlane.f32.xlu1 %v667_v14  ;;  %v663_v15 = vpop.f32.mrb[12].mxu1 }
 0x4e1   :  { %v664_v16 = vadd.f32 %v663_v15, %v2658_v45  ;;  %v2262_v17 = vpop.f32.mrb[13].mxu1 }
 0x4e2   :  { %v2129_v17 = vld [vmem:[%s2913_s4 + $0x10] sm:$0xff] }
 0x4e3   :  { %v670_v19 = vsel %vm184_vm2, %v664_v16, -inf }
 0x4e4   :  { %349 = vadd.xlane.f32.xlu1 %v348_v18  ;;  %671 = vmax.xlane.f32.xlu0 %v670_v19 }
 0x4e8   :  { %352 = vadd.xlane.f32.xlu1 %v351_v20 }
 0x4fa   :  { %685 = vrot.lane.b32.xlu0 %v2643_v38, %s2521_s19 }
 0x56d   :  { %v669_v25 = vpop.xlane.xlu1 %668 }
 0x56e   :  { %v673_v26 = vsub.f32 %v586_v12, %v669_v25 }
 0x570   :  { %v675_v27 = vmul.f32 1.442695, %v673_v26 }
 0x571   :  { %v672_v28 = vpop.xlane.xlu0 %671  ;;  %v350_v43 = vpop.xlane.xlu1 %349 }
 0x572   :  { %2458 = vpow2.f32 %v675_v27  ;;  %v674_v29 = vsub.f32 %v664_v16, %v672_v28 }
 0x574   :  { %v677_v30 = vmul.f32 1.442695, %v674_v29 }
 0x575   :  { %v686_v31 = vpop.permute.xlu0 %685  ;;  %v353_v44 = vpop.xlane.xlu1 %352 }
 0x576   :  { %2460 = vpow2.f32 %v677_v30  ;;  %2264 = vmatpush3.msra.mxu0 %v686_v31 }
 0x577   :  { %2273 = vmatprep.subr.mxu0 %v2118_v39 }
 0x57c   :  { %v2459_v32 = vpop.eup %2458 }
 0x57d   :  { %2266 = vmatmul.mubr.msk.f32.vlgmr.msra.gmra.mrb[0].mxu0 %vm184_vm2, %v2459_v32  ;;  %v679_v33 = vsel %vm184_vm2, %v2459_v32, 0.0 }
 0x57e   :  { %680 = vadd.xlane.f32.xlu0 %v679_v33  ;;  %2274 = vmatpush3.msra.mxu0 %v2118_v39 }
 0x57f   :  { %2278 = vmatprep.subr.mxu0 %v510_v40 }
 0x580   :  { %v2461_v34 = vpop.eup %2460 }
 0x581   :  { %2271 = vmatmul.mubr.msk.f32.vlgmr.msra.gmra.mrb[14].mxu1 %vm184_vm2, %v2461_v34  ;;  %v682_v35 = vsel %vm184_vm2, %v2461_v34, 0.0 }
 0x582   :  { %2284 = vmatpush3.xpose.msk.msra.mxu1 %vm184_vm2, %v1008_v21  ;;  %683 = vadd.xlane.f32.xlu1 %v682_v35 }
 0x583   :  { %2285 = vmatprep.mubr.msk.f32.mxu1 %vm2515_vm1, %v2514_v36  ;;  %2288 = vmatprep.subr.mxu1 %v2514_v36 }
 0x585   :  { %2286 = vmatmul.mubr.msk.f32.vlgmr.msra.gmra.mrb[16].mxu1 %vm184_vm2, %v1006_v22 }
 0x586   :  { %2289 = vmatpush3.xpose.msk.msra.mxu1 %vm184_vm2, %v1086_v23  ;;  %2290 = vmatprep.mubr.msk.f32.mxu1 %vm2515_vm1, %v2514_v36 }
 0x587   :  { %2298 = vmatprep.subr.mxu1 %v2514_v36 }
 0x589   :  { %2291 = vmatmul.mubr.msk.f32.vlgmr.msra.gmra.mrb[18].mxu1 %vm184_vm2, %v1084_v24 }
 0x58a   :  { %2300 = vmatprep.mubr.msk.f32.mxu1 %vm2515_vm1, %v2514_v36 }
 0x594   :  { %1255 = vrot.lane.b32.xlu0 %v2640_v37, %s2524_s22 }
 0x60b   :  { %v681_v41 = vpop.xlane.xlu0 %680 }
 0x60c   :  { %2462 = vrcp.f32 %v681_v41 }
 0x60d   :  { %2464 = vrcp.f32 %v350_v43 }
 0x60f   :  { %v1256_v42 = vpop.permute.xlu0 %1255  ;;  %v684_v46 = vpop.xlane.xlu1 %683 }
 0x610   :  { %2299 = vmatpush3.msra.mxu1 %v1256_v42  ;;  %2466 = vrcp.f32 %v684_v46 }
 0x611   :  { %2308 = vmatprep.subr.mxu1 %v2514_v36  ;;  %2468 = vrcp.f32 %v353_v44 }
 0x616   :  { %v2463_v47 = vpop.eup %2462 }
 0x617   :  { %v2465_v51 = vpop.eup %2464 }
 0x618   :  { %v507_v56 = vmul.f32 %v2465_v51, %v2695_v7  ;;  %v2138_v51 = vld [vmem:[%s2913_s4 + $0x18] sm:$0xff] }
 0x61a   :  { %v2467_v52 = vpop.eup %2466 }
 0x61b   :  { %v2469_v60 = vpop.eup %2468 }
 0x61c   :  { %v509_v63 = vmul.f32 %v2469_v60, %v2697_v9 }
 0x650   :  { %v757_v48 = vpop.f32.mrb[0].mxu0 }
 0x651   :  { %v838_v49 = vmul.f32 %v2463_v47, %v757_v48  ;;  %v2267_v50 = vpop.f32.mrb[1].mxu0 }
 0x653   :  { %2275 = vmatprep.mubr.msk.f32.mxu0 %vm184_vm2, %v838_v49 }
 0x654   :  { %v833_v53 = vpop.f32.mrb[14].mxu1 }
 0x655   :  { %v840_v54 = vmul.f32 %v2467_v52, %v833_v53  ;;  %v2272_v55 = vpop.f32.mrb[15].mxu1 }
 0x657   :  { %2276 = vmatmul.mubr.msk.f32.vlgmr.msra.gmra.mrb[2].mxu0 %vm184_vm2, %v840_v54 }
 0x658   :  { %2280 = vmatprep.mubr.msk.f32.mxu0 %vm184_vm2, %v507_v56  ;;  %v1079_v57 = vpop.f32.mrb[16].mxu1  ;;  %2279 = vmatpush3.msra.mxu0 %v510_v40 }
 0x659   :  { %v1080_v58 = vadd.f32 %v1079_v57, %v2658_v45  ;;  %v2287_v59 = vpop.f32.mrb[17].mxu1  ;;  %2293 = vmatprep.subr.mxu0 %v2514_v36 }
 0x65b   :  { %v1161_v61 = vsel %vm184_vm2, %v1080_v58, -inf }
 0x65c   :  { %1162 = vmax.xlane.f32.xlu1 %v1161_v61  ;;  %v1157_v62 = vpop.f32.mrb[18].mxu1 }
 0x65d   :  { %v1158_v2 = vadd.f32 %v1157_v62, %v2658_v45  ;;  %v2292_v3 = vpop.f32.mrb[19].mxu1 }
 0x65f   :  { %2281 = vmatmul.mubr.msk.f32.vlgmr.msra.gmra.mrb[2].mxu0 %vm184_vm2, %v509_v63  ;;  %v1164_v4 = vsel %vm184_vm2, %v1158_v2, -inf  ;;  %v2141_v63 = vld [vmem:[%s2914_s5] ss:$0 sm:$0xff] }
 0x660   :  { %1165 = vmax.xlane.f32.xlu1 %v1164_v4  ;;  %2295 = vmatprep.mubr.msk.f32.mxu0 %vm2515_vm1, %v2514_v36 }
 0x671   :  { %1179 = vrot.lane.b32.xlu1 %v2643_v38, %s2524_s22 }
 0x675   :  { %1422 = vrot.lane.b32.xlu1 %v2643_v38, %s2525_s26 }
 0x6e9   :  { %v1163_v5 = vpop.xlane.xlu1 %1162 }
 0x6ea   :  { %v1167_v6 = vsub.f32 %v1080_v58, %v1163_v5 }
 0x6ec   :  { %v1169_v7 = vmul.f32 1.442695, %v1167_v6 }
 0x6ed   :  { %v1166_v8 = vpop.xlane.xlu1 %1165 }
 0x6ee   :  { %2470 = vpow2.f32 %v1169_v7  ;;  %v1168_v9 = vsub.f32 %v1158_v2, %v1166_v8 }
 0x6f0   :  { %v1171_v10 = vmul.f32 1.442695, %v1168_v9 }
 0x6f1   :  { %v1180_v11 = vpop.permute.xlu1 %1179 }
 0x6f2   :  { %2472 = vpow2.f32 %v1171_v10  ;;  %2294 = vmatpush3.msra.mxu0 %v1180_v11 }
 0x6f3   :  { %2303 = vmatprep.subr.mxu0 %v2129_v17 }
 0x6f5   :  { %v1423_v15 = vpop.permute.xlu1 %1422 }
 0x6f8   :  { %v2471_v12 = vpop.eup %2470 }
 0x6f9   :  { %2296 = vmatmul.mubr.msk.f32.vlgmr.msra.gmra.mrb[4].mxu0 %vm184_vm2, %v2471_v12  ;;  %v1173_v13 = vsel %vm184_vm2, %v2471_v12, 0.0 }
 0x6fa   :  { %1174 = vadd.xlane.f32.xlu1 %v1173_v13  ;;  %2304 = vmatpush3.msra.mxu0 %v2129_v17  ;;  %v1890_v17 = vld [vmem:[%s2917_s8] sm:$0xff] }
 0x6fb   :  { %2313 = vmatprep.subr.mxu0 %v2514_v36 }
 0x6fc   :  { %v2473_v14 = vpop.eup %2472 }
 0x6fd   :  { %2301 = vmatmul.mubr.msk.f32.vlgmr.msra.gmra.mrb[20].mxu1 %vm184_vm2, %v2473_v14  ;;  %v1176_v16 = vsel %vm184_vm2, %v2473_v14, 0.0 }
 0x6fe   :  { %2309 = vmatpush3.xpose.msk.msra.mxu1 %vm184_vm2, %v1423_v15  ;;  %1177 = vadd.xlane.f32.xlu0 %v1176_v16 }
 0x6ff   :  { %2310 = vmatprep.mubr.msk.f32.mxu1 %vm2515_vm1, %v2514_v36  ;;  %2318 = vmatprep.subr.mxu1 %v2514_v36 }
 0x70b   :  { %1420 = vrot.lane.b32.xlu1 %v2643_v38, %s2526_s27 }
 0x70f   :  { %1498 = vrot.lane.b32.xlu1 %v2640_v37, %s2526_s27 }
 0x714   :  { %1500 = vrot.lane.b32.xlu0 %v2640_v37, %s2525_s26 }
 0x787   :  { %v1175_v18 = vpop.xlane.xlu1 %1174 }
 0x788   :  { %2474 = vrcp.f32 %v1175_v18  ;;  %v1891_v18 = vld [vmem:[%s2917_s8 + $0x8] sm:$0xff] }
 0x78b   :  { %v1421_v19 = vpop.permute.xlu1 %1420  ;;  %v1178_v20 = vpop.xlane.xlu0 %1177 }
 0x78c   :  { %2311 = vmatmul.mubr.msk.f32.vlgmr.msra.gmra.mrb[22].mxu1 %vm184_vm2, %v1421_v19  ;;  %2476 = vrcp.f32 %v1178_v20  ;;  %v2387_v19 = vpack.c.bf16 %v1891_v18, %v1890_v17  ;;  %v1892_v20 = vld [vmem:[%s2917_s8 + $0x10] sm:$0xff] }
 0x78d   :  { %2320 = vmatprep.mubr.msk.f32.mxu1 %vm2515_vm1, %v2514_v36 }
 0x78f   :  { %v1501_v29 = vpop.permute.xlu0 %1500  ;;  %v1499_v30 = vpop.permute.xlu1 %1498 }
 0x792   :  { %v2475_v21 = vpop.eup %2474 }
 0x796   :  { %v2477_v25 = vpop.eup %2476 }
 0x7cc   :  { %v1251_v22 = vpop.f32.mrb[4].mxu0 }
 0x7cd   :  { %v1332_v23 = vmul.f32 %v2475_v21, %v1251_v22  ;;  %v2297_v24 = vpop.f32.mrb[5].mxu0  ;;  %v1893_v21 = vld [vmem:[%s2917_s8 + $0x18] sm:$0xff] }
 0x7ce   :  { %v2391_v22 = vpack.c.bf16 %v1893_v21, %v1892_v20  ;;  %v1985_v24 = vld [vmem:[%s2919_s10 + $0x8] sm:$0xff] }
 0x7cf   :  { %2305 = vmatprep.mubr.msk.f32.mxu0 %vm184_vm2, %v1332_v23  ;;  %v1984_v23 = vld [vmem:[%s2919_s10] sm:$0xff] }
 0x7d0   :  { %v1327_v26 = vpop.f32.mrb[20].mxu1 }
 0x7d1   :  { %v1334_v27 = vmul.f32 %v2477_v25, %v1327_v26  ;;  %v2302_v28 = vpop.f32.mrb[21].mxu1  ;;  %v1986_v25 = vld [vmem:[%s2919_s10 + $0x10] sm:$0xff]  ;;  %v2395_v26 = vpack.c.bf16 %v1985_v24, %v1984_v23 }
 0x7d3   :  { %2306 = vmatmul.mubr.msk.f32.vlgmr.msra.gmra.mrb[2].mxu0 %vm184_vm2, %v1334_v27  ;;  %v1987_v27 = vld [vmem:[%s2919_s10 + $0x18] sm:$0xff] }
 0x7d4   :  { %2314 = vmatpush3.xpose.msk.msra.mxu0 %vm184_vm2, %v1501_v29  ;;  %2315 = vmatprep.mubr.msk.f32.mxu0 %vm2515_vm1, %v2514_v36  ;;  %v2399_v28 = vpack.c.bf16 %v1987_v27, %v1986_v25  ;;  %v1988_v29 = vld [vmem:[%s2919_s10 + $0x20] sm:$0xff] }
 0x7d5   :  { %2323 = vmatprep.subr.mxu0 %v2514_v36 }
 0x7d7   :  { %2316 = vmatmul.mubr.msk.f32.vlgmr.msra.gmra.mrb[6].mxu0 %vm184_vm2, %v1499_v30  ;;  %v1989_v30 = vld [vmem:[%s2919_s10 + $0x28] sm:$0xff] }
 0x7d8   :  { %2325 = vmatprep.mubr.msk.f32.mxu0 %vm2515_vm1, %v2514_v36 }
 0x85f   :  { %v1494_v31 = vpop.f32.mrb[22].mxu1 }
 0x860   :  { %v1495_v32 = vadd.f32 %v1494_v31, %v2658_v45  ;;  %v2312_v33 = vpop.f32.mrb[23].mxu1  ;;  %v2403_v31 = vpack.c.bf16 %v1989_v30, %v1988_v29 }
 0x861   :  { %v1991_v33 = vld [vmem:[%s2919_s10 + $0x38] sm:$0xff] }
 0x862   :  { %v1576_v34 = vsel %vm184_vm2, %v1495_v32, -inf }
 0x863   :  { %1577 = vmax.xlane.f32.xlu1 %v1576_v34 }
 0x874   :  { %1670 = vrot.lane.b32.xlu1 %v2640_v37, %s2527_s30 }
 0x8aa   :  { %v1572_v35 = vpop.f32.mrb[6].mxu0 }
 0x8ab   :  { %v1573_v39 = vadd.f32 %v1572_v35, %v2658_v45  ;;  %v2317_v40 = vpop.f32.mrb[7].mxu0  ;;  %v1992_v35 = vld [vmem:[%s2919_s10 + $0x40] sm:$0xff] }
 0x8ad   :  { %v1579_v41 = vsel %vm184_vm2, %v1573_v39, -inf }
 0x8ae   :  { %1580 = vmax.xlane.f32.xlu0 %v1579_v41  ;;  %v1994_v41 = vld [vmem:[%s2919_s10 + $0x50] sm:$0xff] }
 0x8c4   :  { %1594 = vrot.lane.b32.xlu0 %v2643_v38, %s2527_s30 }
 0x8f0   :  { %v1578_v36 = vpop.xlane.xlu1 %1577 }
 0x8f1   :  { %v1582_v42 = vsub.f32 %v1495_v32, %v1578_v36  ;;  %v1990_v32 = vld [vmem:[%s2919_s10 + $0x30] sm:$0xff]  ;;  %v1995_v36 = vld [vmem:[%s2919_s10 + $0x58] sm:$0xff] }
 0x8f2   :  { %v2407_v34 = vpack.c.bf16 %v1991_v33, %v1990_v32 }
 0x8f3   :  { %v1584_v43 = vmul.f32 1.442695, %v1582_v42  ;;  %v2415_v42 = vpack.c.bf16 %v1995_v36, %v1994_v41 }
 0x8f4   :  { %v1671_v44 = vpop.permute.xlu1 %1670 }
 0x8f5   :  { %2478 = vpow2.f32 %v1584_v43  ;;  %2324 = vmatpush3.msra.mxu0 %v1671_v44  ;;  %v1996_v43 = vld [vmem:[%s2919_s10 + $0x60] sm:$0xff]  ;;  %v1997_v44 = vld [vmem:[%s2919_s10 + $0x68] sm:$0xff] }
 0x8f6   :  { %2328 = vmatprep.subr.mxu0 %v2138_v51 }
 0x8ff   :  { %v2479_v46 = vpop.eup %2478 }
 0x900   :  { %v1588_v47 = vsel %vm184_vm2, %v2479_v46, 0.0 }
 0x901   :  { %1589 = vadd.xlane.f32.xlu1 %v1588_v47 }
 0x93b   :  { %v1581_v37 = vpop.xlane.xlu0 %1580 }
 0x93c   :  { %v1583_v48 = vsub.f32 %v1573_v39, %v1581_v37  ;;  %v1993_v39 = vld [vmem:[%s2919_s10 + $0x48] sm:$0xff] }
 0x93d   :  { %v2411_v40 = vpack.c.bf16 %v1993_v39, %v1992_v35 }
 0x93e   :  { %v1586_v49 = vmul.f32 1.442695, %v1583_v48 }
 0x93f   :  { %v1595_v45 = vpop.permute.xlu0 %1594 }
 0x940   :  { %2480 = vpow2.f32 %v1586_v49  ;;  %2319 = vmatpush3.msra.mxu1 %v1595_v45 }
 0x941   :  { %2321 = vmatmul.mubr.msk.f32.vlgmr.msra.gmra.mrb[24].mxu1 %vm184_vm2, %v2479_v46  ;;  %2388 = vmatprep.subr.bf16.mxu1 %v2387_v19  ;;  %v2419_v46 = vpack.c.bf16 %v1997_v44, %v1996_v43 }
 0x942   :  { %2390 = vmatpush3.bf16.msra.mxu1 %v2387_v19 }
 0x943   :  { %2392 = vmatprep.subr.bf16.mxu1 %v2391_v22 }
 0x946   :  { %2394 = vmatpush3.bf16.msra.mxu1 %v2391_v22 }
 0x94a   :  { %v2481_v50 = vpop.eup %2480 }
 0x94b   :  { %2326 = vmatmul.mubr.msk.f32.vlgmr.msra.gmra.mrb[8].mxu0 %vm184_vm2, %v2481_v50  ;;  %v1591_v38 = vsel %vm184_vm2, %v2481_v50, 0.0 }
 0x94c   :  { %1592 = vadd.xlane.f32.xlu0 %v1591_v38  ;;  %2329 = vmatpush3.msra.mxu0 %v2138_v51  ;;  %v2142_v51 = vld [vmem:[%s2915_s6] ss:$0 sm:$0xff] }
 0x94d   :  { %2396 = vmatprep.subr.bf16.mxu0 %v2395_v26 }
 0x98e   :  { %v1590_v52 = vpop.xlane.xlu1 %1589 }
 0x98f   :  { %2482 = vrcp.f32 %v1590_v52 }
 0x999   :  { %v2483_v54 = vpop.eup %2482 }
 0x9d9   :  { %v1593_v53 = vpop.xlane.xlu0 %1592 }
 0x9da   :  { %2484 = vrcp.f32 %v1593_v53 }
 0x9e4   :  { %v2485_v58 = vpop.eup %2484 }
 0xa14   :  { %v1666_v55 = vpop.f32.mrb[24].mxu1 }
 0xa15   :  { %v1747_v56 = vmul.f32 %v2483_v54, %v1666_v55  ;;  %v2322_v57 = vpop.f32.mrb[25].mxu1  ;;  %v2143_v55 = vld [vmem:[%s2916_s7] ss:$0 sm:$0xff] }
 0xa17   :  { %2330 = vmatprep.mubr.msk.f32.mxu0 %vm184_vm2, %v1747_v56 }
 0xa1e   :  { %v1742_v59 = vpop.f32.mrb[8].mxu0 }
 0xa1f   :  { %v1749_v60 = vmul.f32 %v2485_v58, %v1742_v59  ;;  %v2327_v61 = vpop.f32.mrb[9].mxu0 }
 0xa20   :  { %v1999_v61 = vld [vmem:[%s2919_s10 + $0x78] sm:$0xff] }
 0xa21   :  { %2331 = vmatmul.mubr.msk.f32.vlgmr.msra.gmra.mrb[2].mxu0 %vm184_vm2, %v1749_v60  ;;  %v1998_v60 = vld [vmem:[%s2919_s10 + $0x70] sm:$0xff]  ;;  %s2528_s10 = smov [#allocation2]  }
 0xa22   :  { %2398 = vmatpush3.bf16.msra.mxu0 %v2395_v26  ;;  %s2091_s13 = sshll.u32 %s2528_s10, 4  ;;  %s2092_s13 = int_to_ptr.vmem [resolvable:$true] %s2091_s13 }
 0xa23   :  { %2400 = vmatprep.subr.bf16.mxu0 %v2399_v28  ;;  %p2495_p1 = scmp.lt.s32.totalorder %s2092_s13, %s2092_s13 }
 0xa26   :  { %2402 = vmatpush3.bf16.msra.mxu0 %v2399_v28 }
 0xa27   :  { %2404 = vmatprep.subr.bf16.mxu0 %v2403_v31 }
 0xa2a   :  { %2406 = vmatpush3.bf16.msra.mxu0 %v2403_v31 }
 0xa2b   :  { %2408 = vmatprep.subr.bf16.mxu0 %v2407_v34 }
 0xa2e   :  { %2410 = vmatpush3.bf16.msra.mxu0 %v2407_v34 }
 0xa2f   :  { %2412 = vmatprep.subr.bf16.mxu0 %v2411_v40 }
 0xa32   :  { %2414 = vmatpush3.bf16.msra.mxu0 %v2411_v40 }
 0xa33   :  { %2416 = vmatprep.subr.bf16.mxu0 %v2415_v42 }
 0xa36   :  { %2418 = vmatpush3.bf16.msra.mxu0 %v2415_v42 }
 0xa37   :  { %2420 = vmatprep.subr.bf16.mxu0 %v2419_v46 }
 0xa3a   :  { %2422 = vmatpush3.bf16.msra.mxu0 %v2419_v46 }
 0xaf4   :  { %v2332_v62 = vpop.f32.mrb[2].mxu0 }
 0xaf5   :  { %v1836_v2 = vadd.f32 %v2332_v62, %v2604_v1  ;;  %v1824_v3 = vpop.f32.mrb[3].mxu0  ;;  %v2423_v62 = vpack.c.bf16 %v1999_v61, %v1998_v60 }
 0xaf6   :  { %v1835_v4 = vadd.f32 %v1824_v3, %v2599_v0 }
 0xaf7   :  { %v2797_v5 = vadd.f32 %v2141_v63, %v1836_v2  ;;  %2424 = vmatprep.subr.bf16.mxu0 %v2423_v62 }
 0xaf8   :  { %v2799_v6 = vadd.f32 %v2141_v63, %v1835_v4  ;;  %2426 = vmatpush3.bf16.msra.mxu0 %v2423_v62  ;;  %v2144_v63 = vld [vmem:[%s2918_s9] ss:$0 sm:$0xff]  ;;  %s2490_s9 = scalar_lea.vmem %s2092_s13, 256 }
 0xaf9   :  { %v1851_v7 = vsel %vm46_vm0, %v2797_v5, 0.0  ;;  %p2491_p0 = scmp.ne.s32.totalorder %s2092_s13, %s2490_s9  ;;  %p2496_p2 = scmp.lt.s32.totalorder %s2490_s9, %s2490_s9 }
 0xafa   :  { %1852 = vadd.xlane.f32.xlu1 %v1851_v7  ;;  %v1848_v8 = vsel %vm46_vm0, %v2799_v6, 0.0 }
 0xafb   :  { %1849 = vadd.xlane.f32.xlu0 %v1848_v8  ;;  %p2497_p3 = por %p2496_p2, %p2495_p1 }
 0xafd   :  { %p2498_p4 = pnand %p2497_p3, %p2491_p0 }
 0xb87   :  { %v1853_v9 = vpop.xlane.xlu1 %1852 }
 0xb88   :  { %v1855_v10 = vmul.f32 0.03125, %v1853_v9  ;;  %v1850_v11 = vpop.xlane.xlu0 %1849 }
 0xb89   :  { %v1854_v12 = vmul.f32 0.03125, %v1850_v11 }
 0xb8a   :  { %v2806_v1 = vsub.f32 %v2797_v5, %v1855_v10  ;;  %v2147_v10 = vld [vmem:[%s2920_s11] ss:$0 sm:$0xff] }
 0xb8b   :  { %v2809_v0 = vsub.f32 %v2799_v6, %v1854_v12 }
 0xb8c   :  { %v1859_v13 = vmul.f32 %v2806_v1, %v2806_v1 }
 0xb8d   :  { %v1858_v14 = vmul.f32 %v2809_v0, %v2809_v0 }
 0xb8e   :  { %v1863_v15 = vsel %vm46_vm0, %v1859_v13, 0.0 }
 0xb8f   :  { %1864 = vadd.xlane.f32.xlu1 %v1863_v15  ;;  %v1860_v16 = vsel %vm46_vm0, %v1858_v14, 0.0 }
 0xb90   :  { %1861 = vadd.xlane.f32.xlu0 %v1860_v16 }
 0xc1c   :  { %v1865_v47 = vpop.xlane.xlu1 %1864 }
 0xc1d   :  { %v1867_v37 = vmul.f32 0.03125, %v1865_v47  ;;  %v1862_v48 = vpop.xlane.xlu0 %1861 }
 0xc1e   :  { %v1866_v49 = vmul.f32 0.03125, %v1862_v48 }
 0xc1f   :  { %v1869_v45 = vadd.f32 1e-05, %v1867_v37 }
 0xc20   :  { %v1868_v50 = vadd.f32 1e-05, %v1866_v49 }
 0xc21   :  { %2486 = vrsqrt.f32 %v1869_v45 }
 0xc22   :  { %2488 = vrsqrt.f32 %v1868_v50 }
 0xc2b   :  { %v2487_v38 = vpop.eup %2486 }
 0xc2c   :  { %v2489_v52 = vpop.eup %2488  ;;  %v1873_v53 = vmul.f32 %v2487_v38, %v2806_v1 }
 0xc2d   :  { %v1872_v54 = vmul.f32 %v2489_v52, %v2809_v0 }
 0xc2e   :  { %v1881_v56 = vmul.f32 %v2142_v51, %v1873_v53 }
 0xc2f   :  { %v1880_v57 = vmul.f32 %v2142_v51, %v1872_v54 }
 0xc30   :  { %v1889_v59 = vadd.f32 %v2143_v55, %v1881_v56 }
 0xc31   :  { %v1888_v58 = vadd.f32 %v2143_v55, %v1880_v57 }
 0xc33   :  { %2341 = vmatprep.mubr.msk.f32.mxu1 %vm46_vm0, %v1888_v58 }
 0xc34   :  { %2342 = vmatmul.mubr.msk.f32.vlgmr.msra.gmra.mrb[26].mxu1 %vm46_vm0, %v1889_v59 }
 0xd07   :  { %v2343_v2 = vpop.f32.mrb[26].mxu1 }
 0xd08   :  { %v1979_v3 = vadd.f32 %v2343_v2, %v2144_v63  ;;  %v1973_v4 = vpop.f32.mrb[27].mxu1 }
 0xd09   :  { %v1974_v7 = vadd.f32 %v2144_v63, %v1973_v4 }
 0xd0a   :  { %v1983_v9 = vmax.f32 %v1979_v3, 0.0 }
 0xd0b   :  { %v1982_v8 = vmax.f32 %v1974_v7, 0.0 }
 0xd0d   :  { %2376 = vmatprep.mubr.f32.mxu0 %v1982_v8 }
 0xd0e   :  { %2377 = vmatmul.mubr.f32.vlgmr.msra.gmra.mrb[10].mxu0 %v1983_v9 }
 0xde1   :  { %v2378_v11 = vpop.f32.mrb[10].mxu0 }
 0xde2   :  { %v2079_v12 = vadd.f32 %v2378_v11, %v2147_v10  ;;  %v2073_v1 = vpop.f32.mrb[11].mxu0 }
 0xde3   :  { %v2074_v0 = vadd.f32 %v2147_v10, %v2073_v1 }
 0xde4   :  { %v2083_v13 = vadd.f32 %v2079_v12, %v2797_v5 }
 0xde5   :  { %v2082_v14 = vadd.f32 %v2074_v0, %v2799_v6 }
 0xde6   :  { %2085 = vst.msk [vmem:[#allocation2 + $0x8] sm:$0xff] %vm46_vm0, %v2083_v13 }
 0xde7   :  { %2084 = vst.msk [vmem:[#allocation2] sm:$0xff] %vm46_vm0, %v2082_v14 }
 0xde8   :  { %2501 = shalt.err (!%p2498_p4)
}
 0xde9   :  { %s2502_s4 = scalar_lea.hbm %s2921_s12, 256 }
 0xdea   :  { %p2503_p5 = scmp.ne.s32.totalorder %s2921_s12, %s2502_s4  ;;  %p2506_p6 = scmp.lt.u32.totalorder %s2502_s4, %s2921_s12 }
 0xdec   :  { %p2508_p7 = pnand %p2506_p6, %p2503_p5 }
 0xdee   :  { %2511 = shalt.err (!%p2508_p7)
}
 0xdef   :  { %s2529_s1 = smov 128   ;;  %s2530_s2 = smov 8  }
 0xdf0   :  { %2097 = dma.vmem_to_hbm [thread:$0]  %s2092_s13, 256, %s2921_s12, [#allocation3], %s2529_s1, %s2529_s1, %s2530_s2  }
 0xdf1   :  { %2512 = dma.done.wait [#allocation3], 256  }
 0xdf2   :  { %2513 = vsyncadd [#allocation3], 4294967040 }
 0xdf3   :  { %2101 = vsyncpa [#allocation3], 1 }

// kernel: tpu_custom_call.1
= control target key start
LH: loop header
LB: loop body
LE: loop exit
PB: predicated region body
PF: predicated region fallthrough
CT: control target
= control target key end

     0   :  { %vm46_vm0 = vcmask 261120   ;;  %s2909_s0 = inlined_call_operand.vmem [shape: f32[2,8,32], index: 0, kind: input, shape index: {}]   ;;  %s2910_s1 = inlined_call_operand.vmem [shape: f32[1,32], index: 1, kind: input, shape index: {}]   ;;  %s2911_s2 = inlined_call_operand.vmem [shape: f32[1,32], index: 2, kind: input, shape index: {}]   ;;  %s2912_s3 = inlined_call_operand.vmem [shape: f32[32,96], index: 3, kind: input, shape index: {}]   ;;  %s2913_s4 = inlined_call_operand.vmem [shape: f32[4,8,32], index: 4, kind: input, shape index: {}]   ;;  %s2914_s5 = inlined_call_operand.vmem [shape: f32[1,32], index: 5, kind: input, shape index: {}]   ;;  %s2915_s6 = inlined_call_operand.vmem [shape: f32[1,32], index: 6, kind: input, shape index: {}]   ;;  %s2916_s7 = inlined_call_operand.vmem [shape: f32[1,32], index: 7, kind: input, shape index: {}]   ;;  %s2917_s8 = inlined_call_operand.vmem [shape: f32[32,128], index: 8, kind: input, shape index: {}]   ;;  %s2918_s9 = inlined_call_operand.vmem [shape: f32[1,128], index: 9, kind: input, shape index: {}]   ;;  %s2919_s10 = inlined_call_operand.vmem [shape: f32[128,32], index: 10, kind: input, shape index: {}]   ;;  %s2920_s11 = inlined_call_operand.vmem [shape: f32[1,32], index: 11, kind: input, shape index: {}]   ;;  %s2921_s12 = inlined_call_operand.hbm [shape: f32[2,8,32], index: 12, kind: output, shape index: {}]  }
   0x1   :  { %v2599_v0 = vld [vmem:[%s2909_s0] sm:$0xff]  ;;  %v2604_v1 = vld [vmem:[%s2909_s0 + $0x8] sm:$0xff] }
   0x2   :  { %17 = vsyncpa [#allocation3], 0  ;;  %v47_v2 = vsel %vm46_vm0, %v2599_v0, 0.0  ;;  %v50_v3 = vsel %vm46_vm0, %v2604_v1, 0.0  ;;  %v90_v14 = vld [vmem:[%s2912_s3] sm:$0xff]  ;;  %v91_v15 = vld [vmem:[%s2912_s3 + $0x8] sm:$0xff]  ;;  %v175_v41 = vlaneseq }
   0x3   :  { %48 = vadd.xlane.f32.xlu0 %v47_v2  ;;  %v92_v16 = vld [vmem:[%s2912_s3 + $0x10] sm:$0xff]  ;;  %v2379_v17 = vpack.c.bf16 %v91_v15, %v90_v14  ;;  %v93_v18 = vld [vmem:[%s2912_s3 + $0x18] sm:$0xff]  ;;  %v2102_v27 = vld [vmem:[%s2910_s1] ss:$0 sm:$0xff]  ;;  %v2514_v36 = vmov 0.0   ;;  %vm2515_vm1 = vmmov 0  }
   0x4   :  { %v2383_v19 = vpack.c.bf16 %v93_v18, %v92_v16  ;;  %v2103_v29 = vld [vmem:[%s2911_s2] ss:$0 sm:$0xff]  ;;  %2263 = vmatprep.subr.mxu0 %v2514_v36  ;;  %2265 = vmatprep.mubr.msk.f32.mxu0 %vm2515_vm1, %v2514_v36  ;;  %s2516_s1 = smov 96   ;;  %vm184_vm2 = vcmask 64512   ;;  %v176_v42 = vshrl.u32 %v175_v41, 7  ;;  %v178_v43 = vand.u32 127, %v175_v41 }
   0x5   :  { %2380 = vmatprep.subr.bf16.mxu1 %v2379_v17  ;;  %v2517_v44 = vmov -1e+30   ;;  %s2518_s2 = smov 64   ;;  %s2519_s17 = smov 88  }
   0x6   :  { %2382 = vmatpush3.bf16.msra.mxu1 %v2379_v17  ;;  %vm179_vm3 = vcmp.le.s32.totalorder %v178_v43, %v176_v42  ;;  %s2520_s18 = smov 120   ;;  %s2521_s19 = smov 56  }
   0x7   :  { %51 = vadd.xlane.f32.xlu0 %v50_v3  ;;  %2384 = vmatprep.subr.bf16.mxu1 %v2383_v19  ;;  %v2658_v45 = vsel %vm179_vm3, 0.0, %v2517_v44  ;;  %s2522_s20 = smov 80   ;;  %s2523_s21 = smov 112  }
   0x8   :  { %s2524_s22 = smov 48   ;;  %s2525_s26 = smov 72  }
   0x9   :  { %s2526_s27 = smov 104   ;;  %s2527_s30 = smov 40  }
   0xa   :  { %2386 = vmatpush3.bf16.msra.mxu1 %v2383_v19 }
   0xb   :  { %2233 = vmatprep.subr.mxu1 %v2514_v36 }
  0x90   :  { %v49_v4 = vpop.xlane.xlu0 %48 }
  0x91   :  { %v54_v5 = vmul.f32 0.03125, %v49_v4 }
  0x93   :  { %v56_v6 = vsub.f32 %v2599_v0, %v54_v5 }
  0x94   :  { %v52_v7 = vpop.xlane.xlu0 %51 }
  0x95   :  { %v55_v8 = vmul.f32 0.03125, %v52_v7  ;;  %v58_v9 = vmul.f32 %v56_v6, %v56_v6 }
  0x97   :  { %v57_v10 = vsub.f32 %v2604_v1, %v55_v8  ;;  %v60_v11 = vsel %vm46_vm0, %v58_v9, 0.0 }
  0x98   :  { %61 = vadd.xlane.f32.xlu1 %v60_v11 }
  0x99   :  { %v59_v12 = vmul.f32 %v57_v10, %v57_v10 }
  0x9b   :  { %v63_v13 = vsel %vm46_vm0, %v59_v12, 0.0 }
  0x9c   :  { %64 = vadd.xlane.f32.xlu1 %v63_v13 }
 0x125   :  { %v62_v20 = vpop.xlane.xlu1 %61 }
 0x126   :  { %v66_v21 = vmul.f32 0.03125, %v62_v20 }
 0x128   :  { %v68_v22 = vadd.f32 1e-05, %v66_v21 }
 0x129   :  { %v65_v23 = vpop.xlane.xlu1 %64 }
 0x12a   :  { %2450 = vrsqrt.f32 %v68_v22  ;;  %v67_v24 = vmul.f32 0.03125, %v65_v23 }
 0x12c   :  { %v69_v25 = vadd.f32 1e-05, %v67_v24 }
 0x12e   :  { %2452 = vrsqrt.f32 %v69_v25 }
 0x134   :  { %v2451_v26 = vpop.eup %2450 }
 0x135   :  { %v72_v28 = vmul.f32 %v2451_v26, %v56_v6 }
 0x137   :  { %v80_v30 = vmul.f32 %v2102_v27, %v72_v28 }
 0x138   :  { %v2453_v31 = vpop.eup %2452 }
 0x139   :  { %v73_v32 = vmul.f32 %v2453_v31, %v57_v10  ;;  %v88_v33 = vadd.f32 %v2103_v29, %v80_v30 }
 0x13b   :  { %v81_v34 = vmul.f32 %v2102_v27, %v73_v32  ;;  %2230 = vmatprep.mubr.msk.f32.mxu1 %vm46_vm0, %v88_v33 }
 0x13d   :  { %v89_v35 = vadd.f32 %v2103_v29, %v81_v34 }
 0x13f   :  { %2231 = vmatmul.mubr.msk.f32.vlgmr.msra.gmra.mrb[0].mxu1 %vm46_vm0, %v89_v35 }
 0x140   :  { %2235 = vmatprep.mubr.msk.f32.mxu1 %vm2515_vm1, %v2514_v36 }
 0x212   :  { %v2640_v37 = vpop.f32.mrb[0].mxu1 }
 0x213   :  { %260 = vrot.lane.b32.xlu1 %v2640_v37, %s2516_s1  ;;  %v2643_v38 = vpop.f32.mrb[1].mxu1 }
 0x214   :  { %182 = vrot.lane.b32.xlu0 %v2643_v38, %s2516_s1 }
 0x285   :  { %v261_v40 = vpop.permute.xlu1 %260 }
 0x286   :  { %v183_v39 = vpop.permute.xlu0 %182 }
 0x287   :  { %2234 = vmatpush3.xpose.msk.msra.mxu1 %vm184_vm2, %v183_v39  ;;  %v2118_v39 = vld [vmem:[%s2913_s4 + $0x8] sm:$0xff] }
 0x288   :  { %2238 = vmatprep.subr.mxu1 %v2514_v36 }
 0x28a   :  { %2236 = vmatmul.mubr.msk.f32.vlgmr.msra.gmra.mrb[2].mxu1 %vm184_vm2, %v2643_v38 }
 0x28b   :  { %2239 = vmatpush3.xpose.msk.msra.mxu1 %vm184_vm2, %v261_v40  ;;  %2240 = vmatprep.mubr.msk.f32.mxu1 %vm2515_vm1, %v2514_v36  ;;  %v510_v40 = vld [vmem:[%s2913_s4] sm:$0xff] }
 0x28c   :  { %2243 = vmatprep.subr.mxu1 %v2514_v36 }
 0x28e   :  { %2241 = vmatmul.mubr.msk.f32.vlgmr.msra.gmra.mrb[4].mxu1 %vm184_vm2, %v2640_v37 }
 0x28f   :  { %2245 = vmatprep.mubr.msk.f32.mxu1 %vm2515_vm1, %v2514_v36 }
 0x35d   :  { %v255_v46 = vpop.f32.mrb[2].mxu1 }
 0x35e   :  { %v256_v47 = vadd.f32 %v255_v46, %v2658_v45  ;;  %v2237_v48 = vpop.f32.mrb[3].mxu1 }
 0x360   :  { %v336_v49 = vsel %vm184_vm2, %v256_v47, -inf }
 0x361   :  { %337 = vmax.xlane.f32.xlu1 %v336_v49  ;;  %v332_v50 = vpop.f32.mrb[4].mxu1 }
 0x362   :  { %v333_v51 = vadd.f32 %v332_v50, %v2658_v45  ;;  %v2242_v52 = vpop.f32.mrb[5].mxu1 }
 0x364   :  { %v339_v53 = vsel %vm184_vm2, %v333_v51, -inf }
 0x365   :  { %340 = vmax.xlane.f32.xlu0 %v339_v53 }
 0x372   :  { %430 = vrot.lane.b32.xlu1 %v2640_v37, %s2518_s2 }
 0x376   :  { %513 = vrot.lane.b32.xlu1 %v2643_v38, %s2519_s17 }
 0x37a   :  { %511 = vrot.lane.b32.xlu1 %v2643_v38, %s2520_s18 }
 0x37b   :  { %354 = vrot.lane.b32.xlu0 %v2643_v38, %s2518_s2 }
 0x37e   :  { %589 = vrot.lane.b32.xlu1 %v2640_v37, %s2520_s18 }
 0x37f   :  { %591 = vrot.lane.b32.xlu0 %v2640_v37, %s2519_s17 }
 0x382   :  { %761 = vrot.lane.b32.xlu1 %v2640_v37, %s2521_s19 }
 0x386   :  { %1007 = vrot.lane.b32.xlu1 %v2643_v38, %s2522_s20 }
 0x38a   :  { %1005 = vrot.lane.b32.xlu1 %v2643_v38, %s2523_s21 }
 0x38e   :  { %1085 = vrot.lane.b32.xlu1 %v2640_v37, %s2522_s20 }
 0x392   :  { %1083 = vrot.lane.b32.xlu1 %v2640_v37, %s2523_s21 }
 0x3ee   :  { %v338_v54 = vpop.xlane.xlu1 %337 }
 0x3ef   :  { %v342_v55 = vsub.f32 %v256_v47, %v338_v54 }
 0x3f1   :  { %v344_v56 = vmul.f32 1.442695, %v342_v55 }
 0x3f2   :  { %v341_v57 = vpop.xlane.xlu0 %340  ;;  %v431_v59 = vpop.permute.xlu1 %430 }
 0x3f3   :  { %2454 = vpow2.f32 %v344_v56  ;;  %v343_v58 = vsub.f32 %v333_v51, %v341_v57 }
 0x3f5   :  { %v346_v60 = vmul.f32 1.442695, %v343_v58 }
 0x3f6   :  { %v355_v61 = vpop.permute.xlu0 %354  ;;  %v514_v62 = vpop.permute.xlu1 %513 }
 0x3f7   :  { %2456 = vpow2.f32 %v346_v60  ;;  %2244 = vmatpush3.msra.mxu1 %v355_v61 }
 0x3f8   :  { %2248 = vmatprep.subr.mxu1 %v2514_v36 }
 0x3fa   :  { %v512_v3 = vpop.permute.xlu1 %511  ;;  %v592_v5 = vpop.permute.xlu0 %591 }
 0x3fd   :  { %v2455_v63 = vpop.eup %2454 }
 0x3fe   :  { %2246 = vmatmul.mubr.msk.f32.vlgmr.msra.gmra.mrb[6].mxu1 %vm184_vm2, %v2455_v63  ;;  %v590_v4 = vpop.permute.xlu1 %589  ;;  %v348_v18 = vsel %vm184_vm2, %v2455_v63, 0.0 }
 0x3ff   :  { %2249 = vmatpush3.msra.mxu1 %v431_v59  ;;  %2250 = vmatprep.mubr.msk.f32.mxu1 %vm2515_vm1, %v2514_v36 }
 0x400   :  { %2253 = vmatprep.subr.mxu1 %v2514_v36 }
 0x401   :  { %v2457_v2 = vpop.eup %2456 }
 0x402   :  { %2251 = vmatmul.mubr.msk.f32.vlgmr.msra.gmra.mrb[8].mxu1 %vm184_vm2, %v2457_v2  ;;  %v762_v6 = vpop.permute.xlu1 %761  ;;  %v351_v20 = vsel %vm184_vm2, %v2457_v2, 0.0 }
 0x403   :  { %2255 = vmatprep.mubr.msk.f32.mxu1 %vm2515_vm1, %v2514_v36 }
 0x406   :  { %2254 = vmatpush3.xpose.msk.msra.mxu1 %vm184_vm2, %v514_v62  ;;  %v1008_v21 = vpop.permute.xlu1 %1007 }
 0x407   :  { %2258 = vmatprep.subr.mxu1 %v2514_v36 }
 0x409   :  { %2256 = vmatmul.mubr.msk.f32.vlgmr.msra.gmra.mrb[10].mxu1 %vm184_vm2, %v512_v3 }
 0x40a   :  { %2259 = vmatpush3.xpose.msk.msra.mxu1 %vm184_vm2, %v592_v5  ;;  %2260 = vmatprep.mubr.msk.f32.mxu1 %vm2515_vm1, %v2514_v36  ;;  %v1006_v22 = vpop.permute.xlu1 %1005 }
 0x40b   :  { %2268 = vmatprep.subr.mxu1 %v2514_v36 }
 0x40d   :  { %2261 = vmatmul.mubr.msk.f32.vlgmr.msra.gmra.mrb[12].mxu1 %vm184_vm2, %v590_v4 }
 0x40e   :  { %2269 = vmatpush3.msra.mxu1 %v762_v6  ;;  %2270 = vmatprep.mubr.msk.f32.mxu1 %vm2515_vm1, %v2514_v36  ;;  %v1086_v23 = vpop.permute.xlu1 %1085 }
 0x40f   :  { %2283 = vmatprep.subr.mxu1 %v2514_v36 }
 0x412   :  { %v1084_v24 = vpop.permute.xlu1 %1083 }
 0x4d1   :  { %v2695_v7 = vpop.f32.mrb[6].mxu1 }
 0x4d2   :  { %v2247_v8 = vpop.f32.mrb[7].mxu1 }
 0x4d5   :  { %v2697_v9 = vpop.f32.mrb[8].mxu1 }
 0x4d6   :  { %v2252_v10 = vpop.f32.mrb[9].mxu1 }
 0x4dc   :  { %v585_v11 = vpop.f32.mrb[10].mxu1 }
 0x4dd   :  { %v586_v12 = vadd.f32 %v585_v11, %v2658_v45  ;;  %v2257_v13 = vpop.f32.mrb[11].mxu1 }
 0x4df   :  { %v667_v14 = vsel %vm184_vm2, %v586_v12, -inf }
 0x4e0   :  { %668 = vmax.xlane.f32.xlu1 %v667_v14  ;;  %v663_v15 = vpop.f32.mrb[12].mxu1 }
 0x4e1   :  { %v664_v16 = vadd.f32 %v663_v15, %v2658_v45  ;;  %v2262_v17 = vpop.f32.mrb[13].mxu1 }
 0x4e2   :  { %v2129_v17 = vld [vmem:[%s2913_s4 + $0x10] sm:$0xff] }
 0x4e3   :  { %v670_v19 = vsel %vm184_vm2, %v664_v16, -inf }
 0x4e4   :  { %349 = vadd.xlane.f32.xlu1 %v348_v18  ;;  %671 = vmax.xlane.f32.xlu0 %v670_v19 }
 0x4e8   :  { %352 = vadd.xlane.f32.xlu1 %v351_v20 }
 0x4fa   :  { %685 = vrot.lane.b32.xlu0 %v2643_v38, %s2521_s19 }
 0x56d   :  { %v669_v25 = vpop.xlane.xlu1 %668 }
 0x56e   :  { %v673_v26 = vsub.f32 %v586_v12, %v669_v25 }
 0x570   :  { %v675_v27 = vmul.f32 1.442695, %v673_v26 }
 0x571   :  { %v672_v28 = vpop.xlane.xlu0 %671  ;;  %v350_v43 = vpop.xlane.xlu1 %349 }
 0x572   :  { %2458 = vpow2.f32 %v675_v27  ;;  %v674_v29 = vsub.f32 %v664_v16, %v672_v28 }
 0x574   :  { %v677_v30 = vmul.f32 1.442695, %v674_v29 }
 0x575   :  { %v686_v31 = vpop.permute.xlu0 %685  ;;  %v353_v44 = vpop.xlane.xlu1 %352 }
 0x576   :  { %2460 = vpow2.f32 %v677_v30  ;;  %2264 = vmatpush3.msra.mxu0 %v686_v31 }
 0x577   :  { %2273 = vmatprep.subr.mxu0 %v2118_v39 }
 0x57c   :  { %v2459_v32 = vpop.eup %2458 }
 0x57d   :  { %2266 = vmatmul.mubr.msk.f32.vlgmr.msra.gmra.mrb[0].mxu0 %vm184_vm2, %v2459_v32  ;;  %v679_v33 = vsel %vm184_vm2, %v2459_v32, 0.0 }
 0x57e   :  { %680 = vadd.xlane.f32.xlu0 %v679_v33  ;;  %2274 = vmatpush3.msra.mxu0 %v2118_v39 }
 0x57f   :  { %2278 = vmatprep.subr.mxu0 %v510_v40 }
 0x580   :  { %v2461_v34 = vpop.eup %2460 }
 0x581   :  { %2271 = vmatmul.mubr.msk.f32.vlgmr.msra.gmra.mrb[14].mxu1 %vm184_vm2, %v2461_v34  ;;  %v682_v35 = vsel %vm184_vm2, %v2461_v34, 0.0 }
 0x582   :  { %2284 = vmatpush3.xpose.msk.msra.mxu1 %vm184_vm2, %v1008_v21  ;;  %683 = vadd.xlane.f32.xlu1 %v682_v35 }
 0x583   :  { %2285 = vmatprep.mubr.msk.f32.mxu1 %vm2515_vm1, %v2514_v36  ;;  %2288 = vmatprep.subr.mxu1 %v2514_v36 }
 0x585   :  { %2286 = vmatmul.mubr.msk.f32.vlgmr.msra.gmra.mrb[16].mxu1 %vm184_vm2, %v1006_v22 }
 0x586   :  { %2289 = vmatpush3.xpose.msk.msra.mxu1 %vm184_vm2, %v1086_v23  ;;  %2290 = vmatprep.mubr.msk.f32.mxu1 %vm2515_vm1, %v2514_v36 }
 0x587   :  { %2298 = vmatprep.subr.mxu1 %v2514_v36 }
 0x589   :  { %2291 = vmatmul.mubr.msk.f32.vlgmr.msra.gmra.mrb[18].mxu1 %vm184_vm2, %v1084_v24 }
 0x58a   :  { %2300 = vmatprep.mubr.msk.f32.mxu1 %vm2515_vm1, %v2514_v36 }
 0x594   :  { %1255 = vrot.lane.b32.xlu0 %v2640_v37, %s2524_s22 }
 0x60b   :  { %v681_v41 = vpop.xlane.xlu0 %680 }
 0x60c   :  { %2462 = vrcp.f32 %v681_v41 }
 0x60d   :  { %2464 = vrcp.f32 %v350_v43 }
 0x60f   :  { %v1256_v42 = vpop.permute.xlu0 %1255  ;;  %v684_v46 = vpop.xlane.xlu1 %683 }
 0x610   :  { %2299 = vmatpush3.msra.mxu1 %v1256_v42  ;;  %2466 = vrcp.f32 %v684_v46 }
 0x611   :  { %2308 = vmatprep.subr.mxu1 %v2514_v36  ;;  %2468 = vrcp.f32 %v353_v44 }
 0x616   :  { %v2463_v47 = vpop.eup %2462 }
 0x617   :  { %v2465_v51 = vpop.eup %2464 }
 0x618   :  { %v507_v56 = vmul.f32 %v2465_v51, %v2695_v7  ;;  %v2138_v51 = vld [vmem:[%s2913_s4 + $0x18] sm:$0xff] }
 0x61a   :  { %v2467_v52 = vpop.eup %2466 }
 0x61b   :  { %v2469_v60 = vpop.eup %2468 }
 0x61c   :  { %v509_v63 = vmul.f32 %v2469_v60, %v2697_v9 }
 0x650   :  { %v757_v48 = vpop.f32.mrb[0].mxu0 }
 0x651   :  { %v838_v49 = vmul.f32 %v2463_v47, %v757_v48  ;;  %v2267_v50 = vpop.f32.mrb[1].mxu0 }
 0x653   :  { %2275 = vmatprep.mubr.msk.f32.mxu0 %vm184_vm2, %v838_v49 }
 0x654   :  { %v833_v53 = vpop.f32.mrb[14].mxu1 }
 0x655   :  { %v840_v54 = vmul.f32 %v2467_v52, %v833_v53  ;;  %v2272_v55 = vpop.f32.mrb[15].mxu1 }
 0x657   :  { %2276 = vmatmul.mubr.msk.f32.vlgmr.msra.gmra.mrb[2].mxu0 %vm184_vm2, %v840_v54 }
 0x658   :  { %2280 = vmatprep.mubr.msk.f32.mxu0 %vm184_vm2, %v507_v56  ;;  %v1079_v57 = vpop.f32.mrb[16].mxu1  ;;  %2279 = vmatpush3.msra.mxu0 %v510_v40 }
 0x659   :  { %v1080_v58 = vadd.f32 %v1079_v57, %v2658_v45  ;;  %v2287_v59 = vpop.f32.mrb[17].mxu1  ;;  %2293 = vmatprep.subr.mxu0 %v2514_v36 }
 0x65b   :  { %v1161_v61 = vsel %vm184_vm2, %v1080_v58, -inf }
 0x65c   :  { %1162 = vmax.xlane.f32.xlu1 %v1161_v61  ;;  %v1157_v62 = vpop.f32.mrb[18].mxu1 }
 0x65d   :  { %v1158_v2 = vadd.f32 %v1157_v62, %v2658_v45  ;;  %v2292_v3 = vpop.f32.mrb[19].mxu1 }
 0x65f   :  { %2281 = vmatmul.mubr.msk.f32.vlgmr.msra.gmra.mrb[2].mxu0 %vm184_vm2, %v509_v63  ;;  %v1164_v4 = vsel %vm184_vm2, %v1158_v2, -inf  ;;  %v2141_v63 = vld [vmem:[%s2914_s5] ss:$0 sm:$0xff] }
 0x660   :  { %1165 = vmax.xlane.f32.xlu1 %v1164_v4  ;;  %2295 = vmatprep.mubr.msk.f32.mxu0 %vm2515_vm1, %v2514_v36 }
 0x671   :  { %1179 = vrot.lane.b32.xlu1 %v2643_v38, %s2524_s22 }
 0x675   :  { %1422 = vrot.lane.b32.xlu1 %v2643_v38, %s2525_s26 }
 0x6e9   :  { %v1163_v5 = vpop.xlane.xlu1 %1162 }
 0x6ea   :  { %v1167_v6 = vsub.f32 %v1080_v58, %v1163_v5 }
 0x6ec   :  { %v1169_v7 = vmul.f32 1.442695, %v1167_v6 }
 0x6ed   :  { %v1166_v8 = vpop.xlane.xlu1 %1165 }
 0x6ee   :  { %2470 = vpow2.f32 %v1169_v7  ;;  %v1168_v9 = vsub.f32 %v1158_v2, %v1166_v8 }
 0x6f0   :  { %v1171_v10 = vmul.f32 1.442695, %v1168_v9 }
 0x6f1   :  { %v1180_v11 = vpop.permute.xlu1 %1179 }
 0x6f2   :  { %2472 = vpow2.f32 %v1171_v10  ;;  %2294 = vmatpush3.msra.mxu0 %v1180_v11 }
 0x6f3   :  { %2303 = vmatprep.subr.mxu0 %v2129_v17 }
 0x6f5   :  { %v1423_v15 = vpop.permute.xlu1 %1422 }
 0x6f8   :  { %v2471_v12 = vpop.eup %2470 }
 0x6f9   :  { %2296 = vmatmul.mubr.msk.f32.vlgmr.msra.gmra.mrb[4].mxu0 %vm184_vm2, %v2471_v12  ;;  %v1173_v13 = vsel %vm184_vm2, %v2471_v12, 0.0 }
 0x6fa   :  { %1174 = vadd.xlane.f32.xlu1 %v1173_v13  ;;  %2304 = vmatpush3.msra.mxu0 %v2129_v17  ;;  %v1890_v17 = vld [vmem:[%s2917_s8] sm:$0xff] }
 0x6fb   :  { %2313 = vmatprep.subr.mxu0 %v2514_v36 }
 0x6fc   :  { %v2473_v14 = vpop.eup %2472 }
 0x6fd   :  { %2301 = vmatmul.mubr.msk.f32.vlgmr.msra.gmra.mrb[20].mxu1 %vm184_vm2, %v2473_v14  ;;  %v1176_v16 = vsel %vm184_vm2, %v2473_v14, 0.0 }
 0x6fe   :  { %2309 = vmatpush3.xpose.msk.msra.mxu1 %vm184_vm2, %v1423_v15  ;;  %1177 = vadd.xlane.f32.xlu0 %v1176_v16 }
 0x6ff   :  { %2310 = vmatprep.mubr.msk.f32.mxu1 %vm2515_vm1, %v2514_v36  ;;  %2318 = vmatprep.subr.mxu1 %v2514_v36 }
 0x70b   :  { %1420 = vrot.lane.b32.xlu1 %v2643_v38, %s2526_s27 }
 0x70f   :  { %1498 = vrot.lane.b32.xlu1 %v2640_v37, %s2526_s27 }
 0x714   :  { %1500 = vrot.lane.b32.xlu0 %v2640_v37, %s2525_s26 }
 0x787   :  { %v1175_v18 = vpop.xlane.xlu1 %1174 }
 0x788   :  { %2474 = vrcp.f32 %v1175_v18  ;;  %v1891_v18 = vld [vmem:[%s2917_s8 + $0x8] sm:$0xff] }
 0x78b   :  { %v1421_v19 = vpop.permute.xlu1 %1420  ;;  %v1178_v20 = vpop.xlane.xlu0 %1177 }
 0x78c   :  { %2311 = vmatmul.mubr.msk.f32.vlgmr.msra.gmra.mrb[22].mxu1 %vm184_vm2, %v1421_v19  ;;  %2476 = vrcp.f32 %v1178_v20  ;;  %v2387_v19 = vpack.c.bf16 %v1891_v18, %v1890_v17  ;;  %v1892_v20 = vld [vmem:[%s2917_s8 + $0x10] sm:$0xff] }
 0x78d   :  { %2320 = vmatprep.mubr.msk.f32.mxu1 %vm2515_vm1, %v2514_v36 }
 0x78f   :  { %v1501_v29 = vpop.permute.xlu0 %1500  ;;  %v1499_v30 = vpop.permute.xlu1 %1498 }
 0x792   :  { %v2475_v21 = vpop.eup %2474 }
 0x796   :  { %v2477_v25 = vpop.eup %2476 }
 0x7cc   :  { %v1251_v22 = vpop.f32.mrb[4].mxu0 }
 0x7cd   :  { %v1332_v23 = vmul.f32 %v2475_v21, %v1251_v22  ;;  %v2297_v24 = vpop.f32.mrb[5].mxu0  ;;  %v1893_v21 = vld [vmem:[%s2917_s8 + $0x18] sm:$0xff] }
 0x7ce   :  { %v2391_v22 = vpack.c.bf16 %v1893_v21, %v1892_v20  ;;  %v1985_v24 = vld [vmem:[%s2919_s10 + $0x8] sm:$0xff] }
 0x7cf   :  { %2305 = vmatprep.mubr.msk.f32.mxu0 %vm184_vm2, %v1332_v23  ;;  %v1984_v23 = vld [vmem:[%s2919_s10] sm:$0xff] }
 0x7d0   :  { %v1327_v26 = vpop.f32.mrb[20].mxu1 }
 0x7d1   :  { %v1334_v27 = vmul.f32 %v2477_v25, %v1327_v26  ;;  %v2302_v28 = vpop.f32.mrb[21].mxu1  ;;  %v1986_v25 = vld [vmem:[%s2919_s10 + $0x10] sm:$0xff]  ;;  %v2395_v26 = vpack.c.bf16 %v1985_v24, %v1984_v23 }
 0x7d3   :  { %2306 = vmatmul.mubr.msk.f32.vlgmr.msra.gmra.mrb[2].mxu0 %vm184_vm2, %v1334_v27  ;;  %v1987_v27 = vld [vmem:[%s2919_s10 + $0x18] sm:$0xff] }
 0x7d4   :  { %2314 = vmatpush3.xpose.msk.msra.mxu0 %vm184_vm2, %v1501_v29  ;;  %2315 = vmatprep.mubr.msk.f32.mxu0 %vm2515_vm1, %v2514_v36  ;;  %v2399_v28 = vpack.c.bf16 %v1987_v27, %v1986_v25  ;;  %v1988_v29 = vld [vmem:[%s2919_s10 + $0x20] sm:$0xff] }
 0x7d5   :  { %2323 = vmatprep.subr.mxu0 %v2514_v36 }
 0x7d7   :  { %2316 = vmatmul.mubr.msk.f32.vlgmr.msra.gmra.mrb[6].mxu0 %vm184_vm2, %v1499_v30  ;;  %v1989_v30 = vld [vmem:[%s2919_s10 + $0x28] sm:$0xff] }
 0x7d8   :  { %2325 = vmatprep.mubr.msk.f32.mxu0 %vm2515_vm1, %v2514_v36 }
 0x85f   :  { %v1494_v31 = vpop.f32.mrb[22].mxu1 }
 0x860   :  { %v1495_v32 = vadd.f32 %v1494_v31, %v2658_v45  ;;  %v2312_v33 = vpop.f32.mrb[23].mxu1  ;;  %v2403_v31 = vpack.c.bf16 %v1989_v30, %v1988_v29 }
 0x861   :  { %v1991_v33 = vld [vmem:[%s2919_s10 + $0x38] sm:$0xff] }
 0x862   :  { %v1576_v34 = vsel %vm184_vm2, %v1495_v32, -inf }
 0x863   :  { %1577 = vmax.xlane.f32.xlu1 %v1576_v34 }
 0x874   :  { %1670 = vrot.lane.b32.xlu1 %v2640_v37, %s2527_s30 }
 0x8aa   :  { %v1572_v35 = vpop.f32.mrb[6].mxu0 }
 0x8ab   :  { %v1573_v39 = vadd.f32 %v1572_v35, %v2658_v45  ;;  %v2317_v40 = vpop.f32.mrb[7].mxu0  ;;  %v1992_v35 = vld [vmem:[%s2919_s10 + $0x40] sm:$0xff] }
 0x8ad   :  { %v1579_v41 = vsel %vm184_vm2, %v1573_v39, -inf }
 0x8ae   :  { %1580 = vmax.xlane.f32.xlu0 %v1579_v41  ;;  %v1994_v41 = vld [vmem:[%s2919_s10 + $0x50] sm:$0xff] }
 0x8c4   :  { %1594 = vrot.lane.b32.xlu0 %v2643_v38, %s2527_s30 }
 0x8f0   :  { %v1578_v36 = vpop.xlane.xlu1 %1577 }
 0x8f1   :  { %v1582_v42 = vsub.f32 %v1495_v32, %v1578_v36  ;;  %v1990_v32 = vld [vmem:[%s2919_s10 + $0x30] sm:$0xff]  ;;  %v1995_v36 = vld [vmem:[%s2919_s10 + $0x58] sm:$0xff] }
 0x8f2   :  { %v2407_v34 = vpack.c.bf16 %v1991_v33, %v1990_v32 }
 0x8f3   :  { %v1584_v43 = vmul.f32 1.442695, %v1582_v42  ;;  %v2415_v42 = vpack.c.bf16 %v1995_v36, %v1994_v41 }
 0x8f4   :  { %v1671_v44 = vpop.permute.xlu1 %1670 }
 0x8f5   :  { %2478 = vpow2.f32 %v1584_v43  ;;  %2324 = vmatpush3.msra.mxu0 %v1671_v44  ;;  %v1996_v43 = vld [vmem:[%s2919_s10 + $0x60] sm:$0xff]  ;;  %v1997_v44 = vld [vmem:[%s2919_s10 + $0x68] sm:$0xff] }
 0x8f6   :  { %2328 = vmatprep.subr.mxu0 %v2138_v51 }
 0x8ff   :  { %v2479_v46 = vpop.eup %2478 }
 0x900   :  { %v1588_v47 = vsel %vm184_vm2, %v2479_v46, 0.0 }
 0x901   :  { %1589 = vadd.xlane.f32.xlu1 %v1588_v47 }
 0x93b   :  { %v1581_v37 = vpop.xlane.xlu0 %1580 }
 0x93c   :  { %v1583_v48 = vsub.f32 %v1573_v39, %v1581_v37  ;;  %v1993_v39 = vld [vmem:[%s2919_s10 + $0x48] sm:$0xff] }
 0x93d   :  { %v2411_v40 = vpack.c.bf16 %v1993_v39, %v1992_v35 }
 0x93e   :  { %v1586_v49 = vmul.f32 1.442695, %v1583_v48 }
 0x93f   :  { %v1595_v45 = vpop.permute.xlu0 %1594 }
 0x940   :  { %2480 = vpow2.f32 %v1586_v49  ;;  %2319 = vmatpush3.msra.mxu1 %v1595_v45 }
 0x941   :  { %2321 = vmatmul.mubr.msk.f32.vlgmr.msra.gmra.mrb[24].mxu1 %vm184_vm2, %v2479_v46  ;;  %2388 = vmatprep.subr.bf16.mxu1 %v2387_v19  ;;  %v2419_v46 = vpack.c.bf16 %v1997_v44, %v1996_v43 }
 0x942   :  { %2390 = vmatpush3.bf16.msra.mxu1 %v2387_v19 }
 0x943   :  { %2392 = vmatprep.subr.bf16.mxu1 %v2391_v22 }
 0x946   :  { %2394 = vmatpush3.bf16.msra.mxu1 %v2391_v22 }
 0x94a   :  { %v2481_v50 = vpop.eup %2480 }
 0x94b   :  { %2326 = vmatmul.mubr.msk.f32.vlgmr.msra.gmra.mrb[8].mxu0 %vm184_vm2, %v2481_v50  ;;  %v1591_v38 = vsel %vm184_vm2, %v2481_v50, 0.0 }
 0x94c   :  { %1592 = vadd.xlane.f32.xlu0 %v1591_v38  ;;  %2329 = vmatpush3.msra.mxu0 %v2138_v51  ;;  %v2142_v51 = vld [vmem:[%s2915_s6] ss:$0 sm:$0xff] }
 0x94d   :  { %2396 = vmatprep.subr.bf16.mxu0 %v2395_v26 }
 0x98e   :  { %v1590_v52 = vpop.xlane.xlu1 %1589 }
 0x98f   :  { %2482 = vrcp.f32 %v1590_v52 }
 0x999   :  { %v2483_v54 = vpop.eup %2482 }
 0x9d9   :  { %v1593_v53 = vpop.xlane.xlu0 %1592 }
 0x9da   :  { %2484 = vrcp.f32 %v1593_v53 }
 0x9e4   :  { %v2485_v58 = vpop.eup %2484 }
 0xa14   :  { %v1666_v55 = vpop.f32.mrb[24].mxu1 }
 0xa15   :  { %v1747_v56 = vmul.f32 %v2483_v54, %v1666_v55  ;;  %v2322_v57 = vpop.f32.mrb[25].mxu1  ;;  %v2143_v55 = vld [vmem:[%s2916_s7] ss:$0 sm:$0xff] }
 0xa17   :  { %2330 = vmatprep.mubr.msk.f32.mxu0 %vm184_vm2, %v1747_v56 }
 0xa1e   :  { %v1742_v59 = vpop.f32.mrb[8].mxu0 }
 0xa1f   :  { %v1749_v60 = vmul.f32 %v2485_v58, %v1742_v59  ;;  %v2327_v61 = vpop.f32.mrb[9].mxu0 }
 0xa20   :  { %v1999_v61 = vld [vmem:[%s2919_s10 + $0x78] sm:$0xff] }
 0xa21   :  { %2331 = vmatmul.mubr.msk.f32.vlgmr.msra.gmra.mrb[2].mxu0 %vm184_vm2, %v1749_v60  ;;  %v1998_v60 = vld [vmem:[%s2919_s10 + $0x70] sm:$0xff]  ;;  %s2528_s10 = smov [#allocation2]  }
 0xa22   :  { %2398 = vmatpush3.bf16.msra.mxu0 %v2395_v26  ;;  %s2091_s13 = sshll.u32 %s2528_s10, 4  ;;  %s2092_s13 = int_to_ptr.vmem [resolvable:$true] %s2091_s13 }
 0xa23   :  { %2400 = vmatprep.subr.bf16.mxu0 %v2399_v28  ;;  %p2495_p1 = scmp.lt.s32.totalorder %s2092_s13, %s2092_s13 }
 0xa26   :  { %2402 = vmatpush3.bf16.msra.mxu0 %v2399_v28 }
 0xa27   :  { %2404 = vmatprep.subr.bf16.mxu0 %v2403_v31 }
 0xa2a   :  { %2406 = vmatpush3.bf16.msra.mxu0 %v2403_v31 }
 0xa2b   :  { %2408 = vmatprep.subr.bf16.mxu0 %v2407_v34 }
 0xa2e   :  { %2410 = vmatpush3.bf16.msra.mxu0 %v2407_v34 }
 0xa2f   :  { %2412 = vmatprep.subr.bf16.mxu0 %v2411_v40 }
 0xa32   :  { %2414 = vmatpush3.bf16.msra.mxu0 %v2411_v40 }
 0xa33   :  { %2416 = vmatprep.subr.bf16.mxu0 %v2415_v42 }
 0xa36   :  { %2418 = vmatpush3.bf16.msra.mxu0 %v2415_v42 }
 0xa37   :  { %2420 = vmatprep.subr.bf16.mxu0 %v2419_v46 }
 0xa3a   :  { %2422 = vmatpush3.bf16.msra.mxu0 %v2419_v46 }
 0xaf4   :  { %v2332_v62 = vpop.f32.mrb[2].mxu0 }
 0xaf5   :  { %v1836_v2 = vadd.f32 %v2332_v62, %v2604_v1  ;;  %v1824_v3 = vpop.f32.mrb[3].mxu0  ;;  %v2423_v62 = vpack.c.bf16 %v1999_v61, %v1998_v60 }
 0xaf6   :  { %v1835_v4 = vadd.f32 %v1824_v3, %v2599_v0 }
 0xaf7   :  { %v2797_v5 = vadd.f32 %v2141_v63, %v1836_v2  ;;  %2424 = vmatprep.subr.bf16.mxu0 %v2423_v62 }
 0xaf8   :  { %v2799_v6 = vadd.f32 %v2141_v63, %v1835_v4  ;;  %2426 = vmatpush3.bf16.msra.mxu0 %v2423_v62  ;;  %v2144_v63 = vld [vmem:[%s2918_s9] ss:$0 sm:$0xff]  ;;  %s2490_s9 = scalar_lea.vmem %s2092_s13, 256 }
 0xaf9   :  { %v1851_v7 = vsel %vm46_vm0, %v2797_v5, 0.0  ;;  %p2491_p0 = scmp.ne.s32.totalorder %s2092_s13, %s2490_s9  ;;  %p2496_p2 = scmp.lt.s32.totalorder %s2490_s9, %s2490_s9 }
 0xafa   :  { %1852 = vadd.xlane.f32.xlu1 %v1851_v7  ;;  %v1848_v8 = vsel %vm46_vm0, %v2799_v6, 0.0 }
 0xafb   :  { %1849 = vadd.xlane.f32.xlu0 %v1848_v8  ;;  %p2497_p3 = por %p2496_p2, %p2495_p1 }
 0xafd   :  { %p2498_p4 = pnand %p2497_p3, %p2491_p0 }
 0xb87   :  { %v1853_v9 = vpop.xlane.xlu1 %1852 }
 0xb88   :  { %v1855_v10 = vmul.f32 0.03125, %v1853_v9  ;;  %v1850_v11 = vpop.xlane.xlu0 %1849 }
 0xb89   :  { %v1854_v12 = vmul.f32 0.03125, %v1850_v11 }
 0xb8a   :  { %v2806_v1 = vsub.f32 %v2797_v5, %v1855_v10  ;;  %v2147_v10 = vld [vmem:[%s2920_s11] ss:$0 sm:$0xff] }
 0xb8b   :  { %v2809_v0 = vsub.f32 %v2799_v6, %v1854_v12 }
 0xb8c   :  { %v1859_v13 = vmul.f32 %v2806_v1, %v2806_v1 }
 0xb8d   :  { %v1858_v14 = vmul.f32 %v2809_v0, %v2809_v0 }
 0xb8e   :  { %v1863_v15 = vsel %vm46_vm0, %v1859_v13, 0.0 }
 0xb8f   :  { %1864 = vadd.xlane.f32.xlu1 %v1863_v15  ;;  %v1860_v16 = vsel %vm46_vm0, %v1858_v14, 0.0 }
 0xb90   :  { %1861 = vadd.xlane.f32.xlu0 %v1860_v16 }
 0xc1c   :  { %v1865_v47 = vpop.xlane.xlu1 %1864 }
 0xc1d   :  { %v1867_v37 = vmul.f32 0.03125, %v1865_v47  ;;  %v1862_v48 = vpop.xlane.xlu0 %1861 }
 0xc1e   :  { %v1866_v49 = vmul.f32 0.03125, %v1862_v48 }
 0xc1f   :  { %v1869_v45 = vadd.f32 1e-05, %v1867_v37 }
 0xc20   :  { %v1868_v50 = vadd.f32 1e-05, %v1866_v49 }
 0xc21   :  { %2486 = vrsqrt.f32 %v1869_v45 }
 0xc22   :  { %2488 = vrsqrt.f32 %v1868_v50 }
 0xc2b   :  { %v2487_v38 = vpop.eup %2486 }
 0xc2c   :  { %v2489_v52 = vpop.eup %2488  ;;  %v1873_v53 = vmul.f32 %v2487_v38, %v2806_v1 }
 0xc2d   :  { %v1872_v54 = vmul.f32 %v2489_v52, %v2809_v0 }
 0xc2e   :  { %v1881_v56 = vmul.f32 %v2142_v51, %v1873_v53 }
 0xc2f   :  { %v1880_v57 = vmul.f32 %v2142_v51, %v1872_v54 }
 0xc30   :  { %v1889_v59 = vadd.f32 %v2143_v55, %v1881_v56 }
 0xc31   :  { %v1888_v58 = vadd.f32 %v2143_v55, %v1880_v57 }
 0xc33   :  { %2341 = vmatprep.mubr.msk.f32.mxu1 %vm46_vm0, %v1888_v58 }
 0xc34   :  { %2342 = vmatmul.mubr.msk.f32.vlgmr.msra.gmra.mrb[26].mxu1 %vm46_vm0, %v1889_v59 }
 0xd07   :  { %v2343_v2 = vpop.f32.mrb[26].mxu1 }
 0xd08   :  { %v1979_v3 = vadd.f32 %v2343_v2, %v2144_v63  ;;  %v1973_v4 = vpop.f32.mrb[27].mxu1 }
 0xd09   :  { %v1974_v7 = vadd.f32 %v2144_v63, %v1973_v4 }
 0xd0a   :  { %v1983_v9 = vmax.f32 %v1979_v3, 0.0 }
 0xd0b   :  { %v1982_v8 = vmax.f32 %v1974_v7, 0.0 }
 0xd0d   :  { %2376 = vmatprep.mubr.f32.mxu0 %v1982_v8 }
 0xd0e   :  { %2377 = vmatmul.mubr.f32.vlgmr.msra.gmra.mrb[10].mxu0 %v1983_v9 }
 0xde1   :  { %v2378_v11 = vpop.f32.mrb[10].mxu0 }
 0xde2   :  { %v2079_v12 = vadd.f32 %v2378_v11, %v2147_v10  ;;  %v2073_v1 = vpop.f32.mrb[11].mxu0 }
 0xde3   :  { %v2074_v0 = vadd.f32 %v2147_v10, %v2073_v1 }
 0xde4   :  { %v2083_v13 = vadd.f32 %v2079_v12, %v2797_v5 }
 0xde5   :  { %v2082_v14 = vadd.f32 %v2074_v0, %v2799_v6 }
 0xde6   :  { %2085 = vst.msk [vmem:[#allocation2 + $0x8] sm:$0xff] %vm46_vm0, %v2083_v13 }
 0xde7   :  { %2084 = vst.msk [vmem:[#allocation2] sm:$0xff] %vm46_vm0, %v2082_v14 }
 0xde8   :  { %2501 = shalt.err (!%p2498_p4)
}
 0xde9   :  { %s2502_s4 = scalar_lea.hbm %s2921_s12, 256 }
 0xdea   :  { %p2503_p5 = scmp.ne.s32.totalorder %s2921_s12, %s2502_s4  ;;  %p2506_p6 = scmp.lt.u32.totalorder %s2502_s4, %s2921_s12 }
 0xdec   :  { %p2508_p7 = pnand %p2506_p6, %p2503_p5 }
 0xdee   :  { %2511 = shalt.err (!%p2508_p7)
}
 0xdef   :  { %s2529_s1 = smov 128   ;;  %s2530_s2 = smov 8  }
 0xdf0   :  { %2097 = dma.vmem_to_hbm [thread:$0]  %s2092_s13, 256, %s2921_s12, [#allocation3], %s2529_s1, %s2529_s1, %s2530_s2  }
 0xdf1   :  { %2512 = dma.done.wait [#allocation3], 256  }
 0xdf2   :  { %2513 = vsyncadd [#allocation3], 4294967040 }
 0xdf3   :  { %2101 = vsyncpa [#allocation3], 1 }

</bundles_post_ra>
